<compile_context>
chip_gen: v7x
topology: tpu7x:2x2x1
jax: 0.10.0
libtpu: 0.0.40
codegen_flags: <defaults>
</compile_context>

<pallas_src>
import jax
import jax.numpy as jnp
from jax.experimental import pallas as pl
from jax.experimental.pallas import tpu as pltpu


def _lane_split(S):
    """Split flattened size S into (rows, lanes): lanes a multiple of 128,
    rows a multiple of 8 when possible, so vreg tiles are dense."""
    for L in (1024, 512, 256, 128):
        if S % L == 0 and (S // L) % 8 == 0:
            return S // L, L
    for L in (512, 256, 128):
        if S % L == 0:
            return S // L, L
    return 1, S  # fallback: whole thing in lanes (may be lane-padded)


def _make_convblock_kernel(cin_g, out_g, R, L, count, eps):
    inv_count = 1.0 / float(count)

    def kernel(w_ref, gamma_ref, beta_ref, ph_ref, o_ref):
        # scalar-prefetch (SMEM):
        #   w_ref:     (Cout*cin_g*9,)  flattened OIHW conv weights
        #   gamma_ref: (Cout,)          BN weight
        #   beta_ref:  (Cout,)          BN bias
        # blocked (VMEM):
        #   ph_ref: (1, cin_g*16, R, L) this group's phase-decomposed input
        #   o_ref:  (1, out_g,   R, L)  this group's pooled output slab
        g = pl.program_id(0)
        for ol in range(out_g):
            o_ch = g * out_g + ol              # dynamic output-channel index
            w_base = o_ch * (cin_g * 9)
            # --- 3x3 grouped conv evaluated at the 4 pooling offsets (VPU) ---
            accs = []
            for dh in range(2):
                for dw in range(2):
                    acc = jnp.zeros((R, L), jnp.float32)
                    for cl in range(cin_g):
                        for kh in range(3):
                            for kw in range(3):
                                st = (dh + kh) * 4 + (dw + kw)
                                wv = w_ref[w_base + cl * 9 + kh * 3 + kw]
                                acc = acc + ph_ref[0, cl * 16 + st] * wv
                    accs.append(acc)
            # --- BatchNorm2d: training-mode batch stats, two-pass variance ---
            s1 = (jnp.sum(accs[0], keepdims=True) + jnp.sum(accs[1], keepdims=True)
                  + jnp.sum(accs[2], keepdims=True) + jnp.sum(accs[3], keepdims=True))
            mean = s1 * inv_count                                  # (1, 1)
            sq = jnp.zeros((1, 1), jnp.float32)
            for acc in accs:
                d = acc - mean
                sq = sq + jnp.sum(d * d, keepdims=True)
            var = sq * inv_count                                   # biased var
            scale = gamma_ref[o_ch] * jax.lax.rsqrt(var + eps)     # (1, 1)
            shift = beta_ref[o_ch] - mean * scale                  # (1, 1)
            # --- ReLU + MaxPool2d(2): elementwise max over the 4 phases ------
            pooled = jnp.maximum(accs[0] * scale + shift, 0.0)
            for acc in accs[1:]:
                pooled = jnp.maximum(pooled, jnp.maximum(acc * scale + shift, 0.0))
            o_ref[0, ol] = pooled

    return kernel


def conv_block_forward(x, w, gamma, beta, *, groups, eps=1e-5):
    """x: (N, Cin, H, W) f32; w: (Cout, Cin//groups, 3, 3); gamma/beta: (Cout,)."""
    N, Cin, H, W = x.shape
    Cout = w.shape[0]
    assert H % 2 == 0 and W % 2 == 0, "MaxPool2d(2) phase decomposition needs even H, W"
    assert Cin % groups == 0 and Cout % groups == 0
    H2, W2 = H // 2, W // 2
    G, cin_g, out_g = groups, Cin // groups, Cout // groups
    S = N * H2 * W2
    R, L = _lane_split(S)

    # ---- glue: pad (padding=1) and build the 16 stride-2 phases --------------
    # phases[g, cl*16 + s*4 + t, r, l] = xpad[:, g*cin_g+cl, 2h'+s, 2w'+t]
    xpad = jnp.pad(x.astype(jnp.float32), ((0, 0), (0, 0), (1, 1), (1, 1)))
    phase_list = [xpad[:, :, s:s + 2 * H2:2, t:t + 2 * W2:2]
                  for s in range(4) for t in range(4)]              # each (N,Cin,H2,W2)
    phases = jnp.transpose(jnp.stack(phase_list, 0), (2, 0, 1, 3, 4))  # (Cin,16,N,H2,W2)
    phases = phases.reshape(G, cin_g * 16, R, L)                    # lane-dense

    w_flat = w.astype(jnp.float32).reshape(-1)          # OIHW flattened
    gamma_f = gamma.astype(jnp.float32)
    beta_f = beta.astype(jnp.float32)

    count = N * H * W                                   # pre-pool elems / channel
    kernel = _make_convblock_kernel(cin_g, out_g, R, L, count, eps)

    # VMEM budget: 2 buffers each for the input block and the output block.
    in_block_bytes = cin_g * 16 * R * L * 4
    out_block_bytes = out_g * R * L * 4
    vmem_limit = int(min(100 * 1024 * 1024,
                         max(32 * 1024 * 1024, 4 * (in_block_bytes + out_block_bytes))))

    flops = 2 * count * Cout * cin_g * 9 + 8 * count * Cout
    bytes_accessed = int(phases.size) * 4 + Cout * S * 4 + (int(w_flat.size) + 2 * Cout) * 4
    cost = pl.CostEstimate(flops=flops, transcendentals=Cout, bytes_accessed=bytes_accessed)

    grid_spec = pltpu.PrefetchScalarGridSpec(
        num_scalar_prefetch=3,                 # w_flat, gamma, beta -> SMEM
        grid=(G,),
        in_specs=[pl.BlockSpec((1, cin_g * 16, R, L), lambda g, *_: (g, 0, 0, 0))],
        out_specs=pl.BlockSpec((1, out_g, R, L), lambda g, *_: (g, 0, 0, 0)),
    )

    out_gm = pl.pallas_call(
        kernel,
        grid_spec=grid_spec,
        out_shape=jax.ShapeDtypeStruct((G, out_g, R, L), jnp.float32),
        compiler_params=pltpu.CompilerParams(
            dimension_semantics=("parallel",),
            vmem_limit_bytes=vmem_limit),
        cost_estimate=cost,
    )(w_flat, gamma_f, beta_f, phases)

    # (G, out_g, R, L) == (Cout, S) -> (Cout, N, H2, W2) -> NCHW.
    out = out_gm.reshape(Cout, N, H2, W2)
    return jnp.transpose(out, (1, 0, 2, 3))


def conv_block_reference(x, w, gamma, beta, *, groups, eps=1e-5):
    """Pure-JAX reference with identical semantics (for validation)."""
    y = jax.lax.conv_general_dilated(
        x, w, window_strides=(1, 1), padding=((1, 1), (1, 1)),
        dimension_numbers=("NCHW", "OIHW", "NCHW"),
        feature_group_count=groups)
    mean = jnp.mean(y, axis=(0, 2, 3), keepdims=True)
    var = jnp.mean((y - mean) ** 2, axis=(0, 2, 3), keepdims=True)   # biased
    y = (y - mean) * jax.lax.rsqrt(var + eps)
    y = y * gamma[None, :, None, None] + beta[None, :, None, None]
    y = jnp.maximum(y, 0.0)
    y = jax.lax.reduce_window(y, -jnp.inf, jax.lax.max,
                              (1, 1, 2, 2), (1, 1, 2, 2), "VALID")
    return y


if __name__ == "__main__":
    key = jax.random.PRNGKey(0)
    N, Cin, H, W = 2, 4, 16, 16
    Cout = 8
    groups = 1 if Cin < 4 else 4

    k1, k2, k3, k4 = jax.random.split(key, 4)
    x = jax.random.normal(k1, (N, Cin, H, W), dtype=jnp.float32)
    fan_in = (Cin // groups) * 9
    bound = 1.0 / (fan_in ** 0.5)
    w = jax.random.uniform(k2, (Cout, Cin // groups, 3, 3), jnp.float32, -bound, bound)
    gamma = jax.random.uniform(k3, (Cout,), jnp.float32, 0.5, 1.5)
    beta = jax.random.uniform(k4, (Cout,), jnp.float32, -0.5, 0.5)

    out = conv_block_forward(x, w, gamma, beta, groups=groups)
    out = jax.block_until_ready(out)
    assert out.shape == (N, Cout, H // 2, W // 2), out.shape

    ref = conv_block_reference(x, w, gamma, beta, groups=groups)
    max_err = float(jnp.max(jnp.abs(out - ref)))
    assert jnp.allclose(out, ref, atol=1e-4, rtol=1e-4), f"max_err={max_err}"

    print("KERNEL_OK")
</pallas_src>

<mosaic_0001>
module attributes {stable_mosaic.version = 11 : i64} {
  func.func @kernel(%arg0: i32, %arg1: memref<72xf32, #tpu.memory_space<smem>>, %arg2: memref<8xf32, #tpu.memory_space<smem>>, %arg3: memref<8xf32, #tpu.memory_space<smem>>, %arg4: memref<1x16x1x128xf32, #tpu.memory_space<vmem>>, %arg5: memref<1x2x1x128xf32, #tpu.memory_space<vmem>>) attributes {dimension_semantics = [#tpu.dimension_semantics<parallel>], iteration_bounds = array<i64: 4>, scalar_prefetch = 3 : i64, scratch_operands = 0 : i64, tpu.core_type = #tpu.core_type<tc>, window_params = [{transform_indices = @transform_0, window_bounds = array<i64: 1, 16, 1, 128>}, {transform_indices = @transform_1, window_bounds = array<i64: 1, 2, 1, 128>}]} {
    %c2_i32 = arith.constant 2 : i32
    %0 = arith.muli %arg0, %c2_i32 : i32
    %c0_i32 = arith.constant 0 : i32
    %1 = arith.addi %0, %c0_i32 : i32
    %c9_i32 = arith.constant 9 : i32
    %2 = arith.muli %1, %c9_i32 : i32
    %cst = arith.constant 0.000000e+00 : f32
    %3 = vector.broadcast %cst : f32 to vector<1x128xf32>
    %c0_i32_0 = arith.constant 0 : i32
    %4 = arith.addi %2, %c0_i32_0 : i32
    %c0_i32_1 = arith.constant 0 : i32
    %5 = arith.addi %4, %c0_i32_1 : i32
    %c0_i32_2 = arith.constant 0 : i32
    %6 = arith.addi %5, %c0_i32_2 : i32
    %7 = arith.index_cast %6 : i32 to index
    %8 = memref.load %arg1[%7] : memref<72xf32, #tpu.memory_space<smem>>
    %c0 = arith.constant 0 : index
    %c0_3 = arith.constant 0 : index
    %c0_4 = arith.constant 0 : index
    %c0_5 = arith.constant 0 : index
    %9 = vector.load %arg4[%c0, %c0_3, %c0_4, %c0_5] : memref<1x16x1x128xf32, #tpu.memory_space<vmem>>, vector<1x1x1x128xf32>
    %10 = vector.shape_cast %9 : vector<1x1x1x128xf32> to vector<1x128xf32>
    %11 = vector.broadcast %8 : f32 to vector<1x128xf32>
    %12 = arith.mulf %10, %11 : vector<1x128xf32>
    %13 = arith.addf %3, %12 : vector<1x128xf32>
    %c0_i32_6 = arith.constant 0 : i32
    %14 = arith.addi %2, %c0_i32_6 : i32
    %c0_i32_7 = arith.constant 0 : i32
    %15 = arith.addi %14, %c0_i32_7 : i32
    %c1_i32 = arith.constant 1 : i32
    %16 = arith.addi %15, %c1_i32 : i32
    %17 = arith.index_cast %16 : i32 to index
    %18 = memref.load %arg1[%17] : memref<72xf32, #tpu.memory_space<smem>>
    %c0_8 = arith.constant 0 : index
    %c1 = arith.constant 1 : index
    %c0_9 = arith.constant 0 : index
    %c0_10 = arith.constant 0 : index
    %19 = vector.load %arg4[%c0_8, %c1, %c0_9, %c0_10] : memref<1x16x1x128xf32, #tpu.memory_space<vmem>>, vector<1x1x1x128xf32>
    %20 = vector.shape_cast %19 : vector<1x1x1x128xf32> to vector<1x128xf32>
    %21 = vector.broadcast %18 : f32 to vector<1x128xf32>
    %22 = arith.mulf %20, %21 : vector<1x128xf32>
    %23 = arith.addf %13, %22 : vector<1x128xf32>
    %c0_i32_11 = arith.constant 0 : i32
    %24 = arith.addi %2, %c0_i32_11 : i32
    %c0_i32_12 = arith.constant 0 : i32
    %25 = arith.addi %24, %c0_i32_12 : i32
    %c2_i32_13 = arith.constant 2 : i32
    %26 = arith.addi %25, %c2_i32_13 : i32
    %27 = arith.index_cast %26 : i32 to index
    %28 = memref.load %arg1[%27] : memref<72xf32, #tpu.memory_space<smem>>
    %c0_14 = arith.constant 0 : index
    %c2 = arith.constant 2 : index
    %c0_15 = arith.constant 0 : index
    %c0_16 = arith.constant 0 : index
    %29 = vector.load %arg4[%c0_14, %c2, %c0_15, %c0_16] : memref<1x16x1x128xf32, #tpu.memory_space<vmem>>, vector<1x1x1x128xf32>
    %30 = vector.shape_cast %29 : vector<1x1x1x128xf32> to vector<1x128xf32>
    %31 = vector.broadcast %28 : f32 to vector<1x128xf32>
    %32 = arith.mulf %30, %31 : vector<1x128xf32>
    %33 = arith.addf %23, %32 : vector<1x128xf32>
    %c0_i32_17 = arith.constant 0 : i32
    %34 = arith.addi %2, %c0_i32_17 : i32
    %c3_i32 = arith.constant 3 : i32
    %35 = arith.addi %34, %c3_i32 : i32
    %c0_i32_18 = arith.constant 0 : i32
    %36 = arith.addi %35, %c0_i32_18 : i32
    %37 = arith.index_cast %36 : i32 to index
    %38 = memref.load %arg1[%37] : memref<72xf32, #tpu.memory_space<smem>>
    %c0_19 = arith.constant 0 : index
    %c4 = arith.constant 4 : index
    %c0_20 = arith.constant 0 : index
    %c0_21 = arith.constant 0 : index
    %39 = vector.load %arg4[%c0_19, %c4, %c0_20, %c0_21] : memref<1x16x1x128xf32, #tpu.memory_space<vmem>>, vector<1x1x1x128xf32>
    %40 = vector.shape_cast %39 : vector<1x1x1x128xf32> to vector<1x128xf32>
    %41 = vector.broadcast %38 : f32 to vector<1x128xf32>
    %42 = arith.mulf %40, %41 : vector<1x128xf32>
    %43 = arith.addf %33, %42 : vector<1x128xf32>
    %c0_i32_22 = arith.constant 0 : i32
    %44 = arith.addi %2, %c0_i32_22 : i32
    %c3_i32_23 = arith.constant 3 : i32
    %45 = arith.addi %44, %c3_i32_23 : i32
    %c1_i32_24 = arith.constant 1 : i32
    %46 = arith.addi %45, %c1_i32_24 : i32
    %47 = arith.index_cast %46 : i32 to index
    %48 = memref.load %arg1[%47] : memref<72xf32, #tpu.memory_space<smem>>
    %c0_25 = arith.constant 0 : index
    %c5 = arith.constant 5 : index
    %c0_26 = arith.constant 0 : index
    %c0_27 = arith.constant 0 : index
    %49 = vector.load %arg4[%c0_25, %c5, %c0_26, %c0_27] : memref<1x16x1x128xf32, #tpu.memory_space<vmem>>, vector<1x1x1x128xf32>
    %50 = vector.shape_cast %49 : vector<1x1x1x128xf32> to vector<1x128xf32>
    %51 = vector.broadcast %48 : f32 to vector<1x128xf32>
    %52 = arith.mulf %50, %51 : vector<1x128xf32>
    %53 = arith.addf %43, %52 : vector<1x128xf32>
    %c0_i32_28 = arith.constant 0 : i32
    %54 = arith.addi %2, %c0_i32_28 : i32
    %c3_i32_29 = arith.constant 3 : i32
    %55 = arith.addi %54, %c3_i32_29 : i32
    %c2_i32_30 = arith.constant 2 : i32
    %56 = arith.addi %55, %c2_i32_30 : i32
    %57 = arith.index_cast %56 : i32 to index
    %58 = memref.load %arg1[%57] : memref<72xf32, #tpu.memory_space<smem>>
    %c0_31 = arith.constant 0 : index
    %c6 = arith.constant 6 : index
    %c0_32 = arith.constant 0 : index
    %c0_33 = arith.constant 0 : index
    %59 = vector.load %arg4[%c0_31, %c6, %c0_32, %c0_33] : memref<1x16x1x128xf32, #tpu.memory_space<vmem>>, vector<1x1x1x128xf32>
    %60 = vector.shape_cast %59 : vector<1x1x1x128xf32> to vector<1x128xf32>
    %61 = vector.broadcast %58 : f32 to vector<1x128xf32>
    %62 = arith.mulf %60, %61 : vector<1x128xf32>
    %63 = arith.addf %53, %62 : vector<1x128xf32>
    %c0_i32_34 = arith.constant 0 : i32
    %64 = arith.addi %2, %c0_i32_34 : i32
    %c6_i32 = arith.constant 6 : i32
    %65 = arith.addi %64, %c6_i32 : i32
    %c0_i32_35 = arith.constant 0 : i32
    %66 = arith.addi %65, %c0_i32_35 : i32
    %67 = arith.index_cast %66 : i32 to index
    %68 = memref.load %arg1[%67] : memref<72xf32, #tpu.memory_space<smem>>
    %c0_36 = arith.constant 0 : index
    %c8 = arith.constant 8 : index
    %c0_37 = arith.constant 0 : index
    %c0_38 = arith.constant 0 : index
    %69 = vector.load %arg4[%c0_36, %c8, %c0_37, %c0_38] : memref<1x16x1x128xf32, #tpu.memory_space<vmem>>, vector<1x1x1x128xf32>
    %70 = vector.shape_cast %69 : vector<1x1x1x128xf32> to vector<1x128xf32>
    %71 = vector.broadcast %68 : f32 to vector<1x128xf32>
    %72 = arith.mulf %70, %71 : vector<1x128xf32>
    %73 = arith.addf %63, %72 : vector<1x128xf32>
    %c0_i32_39 = arith.constant 0 : i32
    %74 = arith.addi %2, %c0_i32_39 : i32
    %c6_i32_40 = arith.constant 6 : i32
    %75 = arith.addi %74, %c6_i32_40 : i32
    %c1_i32_41 = arith.constant 1 : i32
    %76 = arith.addi %75, %c1_i32_41 : i32
    %77 = arith.index_cast %76 : i32 to index
    %78 = memref.load %arg1[%77] : memref<72xf32, #tpu.memory_space<smem>>
    %c0_42 = arith.constant 0 : index
    %c9 = arith.constant 9 : index
    %c0_43 = arith.constant 0 : index
    %c0_44 = arith.constant 0 : index
    %79 = vector.load %arg4[%c0_42, %c9, %c0_43, %c0_44] : memref<1x16x1x128xf32, #tpu.memory_space<vmem>>, vector<1x1x1x128xf32>
    %80 = vector.shape_cast %79 : vector<1x1x1x128xf32> to vector<1x128xf32>
    %81 = vector.broadcast %78 : f32 to vector<1x128xf32>
    %82 = arith.mulf %80, %81 : vector<1x128xf32>
    %83 = arith.addf %73, %82 : vector<1x128xf32>
    %c0_i32_45 = arith.constant 0 : i32
    %84 = arith.addi %2, %c0_i32_45 : i32
    %c6_i32_46 = arith.constant 6 : i32
    %85 = arith.addi %84, %c6_i32_46 : i32
    %c2_i32_47 = arith.constant 2 : i32
    %86 = arith.addi %85, %c2_i32_47 : i32
    %87 = arith.index_cast %86 : i32 to index
    %88 = memref.load %arg1[%87] : memref<72xf32, #tpu.memory_space<smem>>
    %c0_48 = arith.constant 0 : index
    %c10 = arith.constant 10 : index
    %c0_49 = arith.constant 0 : index
    %c0_50 = arith.constant 0 : index
    %89 = vector.load %arg4[%c0_48, %c10, %c0_49, %c0_50] : memref<1x16x1x128xf32, #tpu.memory_space<vmem>>, vector<1x1x1x128xf32>
    %90 = vector.shape_cast %89 : vector<1x1x1x128xf32> to vector<1x128xf32>
    %91 = vector.broadcast %88 : f32 to vector<1x128xf32>
    %92 = arith.mulf %90, %91 : vector<1x128xf32>
    %93 = arith.addf %83, %92 : vector<1x128xf32>
    %cst_51 = arith.constant 0.000000e+00 : f32
    %94 = vector.broadcast %cst_51 : f32 to vector<1x128xf32>
    %c0_i32_52 = arith.constant 0 : i32
    %95 = arith.addi %2, %c0_i32_52 : i32
    %c0_i32_53 = arith.constant 0 : i32
    %96 = arith.addi %95, %c0_i32_53 : i32
    %c0_i32_54 = arith.constant 0 : i32
    %97 = arith.addi %96, %c0_i32_54 : i32
    %98 = arith.index_cast %97 : i32 to index
    %99 = memref.load %arg1[%98] : memref<72xf32, #tpu.memory_space<smem>>
    %c0_55 = arith.constant 0 : index
    %c1_56 = arith.constant 1 : index
    %c0_57 = arith.constant 0 : index
    %c0_58 = arith.constant 0 : index
    %100 = vector.load %arg4[%c0_55, %c1_56, %c0_57, %c0_58] : memref<1x16x1x128xf32, #tpu.memory_space<vmem>>, vector<1x1x1x128xf32>
    %101 = vector.shape_cast %100 : vector<1x1x1x128xf32> to vector<1x128xf32>
    %102 = vector.broadcast %99 : f32 to vector<1x128xf32>
    %103 = arith.mulf %101, %102 : vector<1x128xf32>
    %104 = arith.addf %94, %103 : vector<1x128xf32>
    %c0_i32_59 = arith.constant 0 : i32
    %105 = arith.addi %2, %c0_i32_59 : i32
    %c0_i32_60 = arith.constant 0 : i32
    %106 = arith.addi %105, %c0_i32_60 : i32
    %c1_i32_61 = arith.constant 1 : i32
    %107 = arith.addi %106, %c1_i32_61 : i32
    %108 = arith.index_cast %107 : i32 to index
    %109 = memref.load %arg1[%108] : memref<72xf32, #tpu.memory_space<smem>>
    %c0_62 = arith.constant 0 : index
    %c2_63 = arith.constant 2 : index
    %c0_64 = arith.constant 0 : index
    %c0_65 = arith.constant 0 : index
    %110 = vector.load %arg4[%c0_62, %c2_63, %c0_64, %c0_65] : memref<1x16x1x128xf32, #tpu.memory_space<vmem>>, vector<1x1x1x128xf32>
    %111 = vector.shape_cast %110 : vector<1x1x1x128xf32> to vector<1x128xf32>
    %112 = vector.broadcast %109 : f32 to vector<1x128xf32>
    %113 = arith.mulf %111, %112 : vector<1x128xf32>
    %114 = arith.addf %104, %113 : vector<1x128xf32>
    %c0_i32_66 = arith.constant 0 : i32
    %115 = arith.addi %2, %c0_i32_66 : i32
    %c0_i32_67 = arith.constant 0 : i32
    %116 = arith.addi %115, %c0_i32_67 : i32
    %c2_i32_68 = arith.constant 2 : i32
    %117 = arith.addi %116, %c2_i32_68 : i32
    %118 = arith.index_cast %117 : i32 to index
    %119 = memref.load %arg1[%118] : memref<72xf32, #tpu.memory_space<smem>>
    %c0_69 = arith.constant 0 : index
    %c3 = arith.constant 3 : index
    %c0_70 = arith.constant 0 : index
    %c0_71 = arith.constant 0 : index
    %120 = vector.load %arg4[%c0_69, %c3, %c0_70, %c0_71] : memref<1x16x1x128xf32, #tpu.memory_space<vmem>>, vector<1x1x1x128xf32>
    %121 = vector.shape_cast %120 : vector<1x1x1x128xf32> to vector<1x128xf32>
    %122 = vector.broadcast %119 : f32 to vector<1x128xf32>
    %123 = arith.mulf %121, %122 : vector<1x128xf32>
    %124 = arith.addf %114, %123 : vector<1x128xf32>
    %c0_i32_72 = arith.constant 0 : i32
    %125 = arith.addi %2, %c0_i32_72 : i32
    %c3_i32_73 = arith.constant 3 : i32
    %126 = arith.addi %125, %c3_i32_73 : i32
    %c0_i32_74 = arith.constant 0 : i32
    %127 = arith.addi %126, %c0_i32_74 : i32
    %128 = arith.index_cast %127 : i32 to index
    %129 = memref.load %arg1[%128] : memref<72xf32, #tpu.memory_space<smem>>
    %c0_75 = arith.constant 0 : index
    %c5_76 = arith.constant 5 : index
    %c0_77 = arith.constant 0 : index
    %c0_78 = arith.constant 0 : index
    %130 = vector.load %arg4[%c0_75, %c5_76, %c0_77, %c0_78] : memref<1x16x1x128xf32, #tpu.memory_space<vmem>>, vector<1x1x1x128xf32>
    %131 = vector.shape_cast %130 : vector<1x1x1x128xf32> to vector<1x128xf32>
    %132 = vector.broadcast %129 : f32 to vector<1x128xf32>
    %133 = arith.mulf %131, %132 : vector<1x128xf32>
    %134 = arith.addf %124, %133 : vector<1x128xf32>
    %c0_i32_79 = arith.constant 0 : i32
    %135 = arith.addi %2, %c0_i32_79 : i32
    %c3_i32_80 = arith.constant 3 : i32
    %136 = arith.addi %135, %c3_i32_80 : i32
    %c1_i32_81 = arith.constant 1 : i32
    %137 = arith.addi %136, %c1_i32_81 : i32
    %138 = arith.index_cast %137 : i32 to index
    %139 = memref.load %arg1[%138] : memref<72xf32, #tpu.memory_space<smem>>
    %c0_82 = arith.constant 0 : index
    %c6_83 = arith.constant 6 : index
    %c0_84 = arith.constant 0 : index
    %c0_85 = arith.constant 0 : index
    %140 = vector.load %arg4[%c0_82, %c6_83, %c0_84, %c0_85] : memref<1x16x1x128xf32, #tpu.memory_space<vmem>>, vector<1x1x1x128xf32>
    %141 = vector.shape_cast %140 : vector<1x1x1x128xf32> to vector<1x128xf32>
    %142 = vector.broadcast %139 : f32 to vector<1x128xf32>
    %143 = arith.mulf %141, %142 : vector<1x128xf32>
    %144 = arith.addf %134, %143 : vector<1x128xf32>
    %c0_i32_86 = arith.constant 0 : i32
    %145 = arith.addi %2, %c0_i32_86 : i32
    %c3_i32_87 = arith.constant 3 : i32
    %146 = arith.addi %145, %c3_i32_87 : i32
    %c2_i32_88 = arith.constant 2 : i32
    %147 = arith.addi %146, %c2_i32_88 : i32
    %148 = arith.index_cast %147 : i32 to index
    %149 = memref.load %arg1[%148] : memref<72xf32, #tpu.memory_space<smem>>
    %c0_89 = arith.constant 0 : index
    %c7 = arith.constant 7 : index
    %c0_90 = arith.constant 0 : index
    %c0_91 = arith.constant 0 : index
    %150 = vector.load %arg4[%c0_89, %c7, %c0_90, %c0_91] : memref<1x16x1x128xf32, #tpu.memory_space<vmem>>, vector<1x1x1x128xf32>
    %151 = vector.shape_cast %150 : vector<1x1x1x128xf32> to vector<1x128xf32>
    %152 = vector.broadcast %149 : f32 to vector<1x128xf32>
    %153 = arith.mulf %151, %152 : vector<1x128xf32>
    %154 = arith.addf %144, %153 : vector<1x128xf32>
    %c0_i32_92 = arith.constant 0 : i32
    %155 = arith.addi %2, %c0_i32_92 : i32
    %c6_i32_93 = arith.constant 6 : i32
    %156 = arith.addi %155, %c6_i32_93 : i32
    %c0_i32_94 = arith.constant 0 : i32
    %157 = arith.addi %156, %c0_i32_94 : i32
    %158 = arith.index_cast %157 : i32 to index
    %159 = memref.load %arg1[%158] : memref<72xf32, #tpu.memory_space<smem>>
    %c0_95 = arith.constant 0 : index
    %c9_96 = arith.constant 9 : index
    %c0_97 = arith.constant 0 : index
    %c0_98 = arith.constant 0 : index
    %160 = vector.load %arg4[%c0_95, %c9_96, %c0_97, %c0_98] : memref<1x16x1x128xf32, #tpu.memory_space<vmem>>, vector<1x1x1x128xf32>
    %161 = vector.shape_cast %160 : vector<1x1x1x128xf32> to vector<1x128xf32>
    %162 = vector.broadcast %159 : f32 to vector<1x128xf32>
    %163 = arith.mulf %161, %162 : vector<1x128xf32>
    %164 = arith.addf %154, %163 : vector<1x128xf32>
    %c0_i32_99 = arith.constant 0 : i32
    %165 = arith.addi %2, %c0_i32_99 : i32
    %c6_i32_100 = arith.constant 6 : i32
    %166 = arith.addi %165, %c6_i32_100 : i32
    %c1_i32_101 = arith.constant 1 : i32
    %167 = arith.addi %166, %c1_i32_101 : i32
    %168 = arith.index_cast %167 : i32 to index
    %169 = memref.load %arg1[%168] : memref<72xf32, #tpu.memory_space<smem>>
    %c0_102 = arith.constant 0 : index
    %c10_103 = arith.constant 10 : index
    %c0_104 = arith.constant 0 : index
    %c0_105 = arith.constant 0 : index
    %170 = vector.load %arg4[%c0_102, %c10_103, %c0_104, %c0_105] : memref<1x16x1x128xf32, #tpu.memory_space<vmem>>, vector<1x1x1x128xf32>
    %171 = vector.shape_cast %170 : vector<1x1x1x128xf32> to vector<1x128xf32>
    %172 = vector.broadcast %169 : f32 to vector<1x128xf32>
    %173 = arith.mulf %171, %172 : vector<1x128xf32>
    %174 = arith.addf %164, %173 : vector<1x128xf32>
    %c0_i32_106 = arith.constant 0 : i32
    %175 = arith.addi %2, %c0_i32_106 : i32
    %c6_i32_107 = arith.constant 6 : i32
    %176 = arith.addi %175, %c6_i32_107 : i32
    %c2_i32_108 = arith.constant 2 : i32
    %177 = arith.addi %176, %c2_i32_108 : i32
    %178 = arith.index_cast %177 : i32 to index
    %179 = memref.load %arg1[%178] : memref<72xf32, #tpu.memory_space<smem>>
    %c0_109 = arith.constant 0 : index
    %c11 = arith.constant 11 : index
    %c0_110 = arith.constant 0 : index
    %c0_111 = arith.constant 0 : index
    %180 = vector.load %arg4[%c0_109, %c11, %c0_110, %c0_111] : memref<1x16x1x128xf32, #tpu.memory_space<vmem>>, vector<1x1x1x128xf32>
    %181 = vector.shape_cast %180 : vector<1x1x1x128xf32> to vector<1x128xf32>
    %182 = vector.broadcast %179 : f32 to vector<1x128xf32>
    %183 = arith.mulf %181, %182 : vector<1x128xf32>
    %184 = arith.addf %174, %183 : vector<1x128xf32>
    %cst_112 = arith.constant 0.000000e+00 : f32
    %185 = vector.broadcast %cst_112 : f32 to vector<1x128xf32>
    %c0_i32_113 = arith.constant 0 : i32
    %186 = arith.addi %2, %c0_i32_113 : i32
    %c0_i32_114 = arith.constant 0 : i32
    %187 = arith.addi %186, %c0_i32_114 : i32
    %c0_i32_115 = arith.constant 0 : i32
    %188 = arith.addi %187, %c0_i32_115 : i32
    %189 = arith.index_cast %188 : i32 to index
    %190 = memref.load %arg1[%189] : memref<72xf32, #tpu.memory_space<smem>>
    %c0_116 = arith.constant 0 : index
    %c4_117 = arith.constant 4 : index
    %c0_118 = arith.constant 0 : index
    %c0_119 = arith.constant 0 : index
    %191 = vector.load %arg4[%c0_116, %c4_117, %c0_118, %c0_119] : memref<1x16x1x128xf32, #tpu.memory_space<vmem>>, vector<1x1x1x128xf32>
    %192 = vector.shape_cast %191 : vector<1x1x1x128xf32> to vector<1x128xf32>
    %193 = vector.broadcast %190 : f32 to vector<1x128xf32>
    %194 = arith.mulf %192, %193 : vector<1x128xf32>
    %195 = arith.addf %185, %194 : vector<1x128xf32>
    %c0_i32_120 = arith.constant 0 : i32
    %196 = arith.addi %2, %c0_i32_120 : i32
    %c0_i32_121 = arith.constant 0 : i32
    %197 = arith.addi %196, %c0_i32_121 : i32
    %c1_i32_122 = arith.constant 1 : i32
    %198 = arith.addi %197, %c1_i32_122 : i32
    %199 = arith.index_cast %198 : i32 to index
    %200 = memref.load %arg1[%199] : memref<72xf32, #tpu.memory_space<smem>>
    %c0_123 = arith.constant 0 : index
    %c5_124 = arith.constant 5 : index
    %c0_125 = arith.constant 0 : index
    %c0_126 = arith.constant 0 : index
    %201 = vector.load %arg4[%c0_123, %c5_124, %c0_125, %c0_126] : memref<1x16x1x128xf32, #tpu.memory_space<vmem>>, vector<1x1x1x128xf32>
    %202 = vector.shape_cast %201 : vector<1x1x1x128xf32> to vector<1x128xf32>
    %203 = vector.broadcast %200 : f32 to vector<1x128xf32>
    %204 = arith.mulf %202, %203 : vector<1x128xf32>
    %205 = arith.addf %195, %204 : vector<1x128xf32>
    %c0_i32_127 = arith.constant 0 : i32
    %206 = arith.addi %2, %c0_i32_127 : i32
    %c0_i32_128 = arith.constant 0 : i32
    %207 = arith.addi %206, %c0_i32_128 : i32
    %c2_i32_129 = arith.constant 2 : i32
    %208 = arith.addi %207, %c2_i32_129 : i32
    %209 = arith.index_cast %208 : i32 to index
    %210 = memref.load %arg1[%209] : memref<72xf32, #tpu.memory_space<smem>>
    %c0_130 = arith.constant 0 : index
    %c6_131 = arith.constant 6 : index
    %c0_132 = arith.constant 0 : index
    %c0_133 = arith.constant 0 : index
    %211 = vector.load %arg4[%c0_130, %c6_131, %c0_132, %c0_133] : memref<1x16x1x128xf32, #tpu.memory_space<vmem>>, vector<1x1x1x128xf32>
    %212 = vector.shape_cast %211 : vector<1x1x1x128xf32> to vector<1x128xf32>
    %213 = vector.broadcast %210 : f32 to vector<1x128xf32>
    %214 = arith.mulf %212, %213 : vector<1x128xf32>
    %215 = arith.addf %205, %214 : vector<1x128xf32>
    %c0_i32_134 = arith.constant 0 : i32
    %216 = arith.addi %2, %c0_i32_134 : i32
    %c3_i32_135 = arith.constant 3 : i32
    %217 = arith.addi %216, %c3_i32_135 : i32
    %c0_i32_136 = arith.constant 0 : i32
    %218 = arith.addi %217, %c0_i32_136 : i32
    %219 = arith.index_cast %218 : i32 to index
    %220 = memref.load %arg1[%219] : memref<72xf32, #tpu.memory_space<smem>>
    %c0_137 = arith.constant 0 : index
    %c8_138 = arith.constant 8 : index
    %c0_139 = arith.constant 0 : index
    %c0_140 = arith.constant 0 : index
    %221 = vector.load %arg4[%c0_137, %c8_138, %c0_139, %c0_140] : memref<1x16x1x128xf32, #tpu.memory_space<vmem>>, vector<1x1x1x128xf32>
    %222 = vector.shape_cast %221 : vector<1x1x1x128xf32> to vector<1x128xf32>
    %223 = vector.broadcast %220 : f32 to vector<1x128xf32>
    %224 = arith.mulf %222, %223 : vector<1x128xf32>
    %225 = arith.addf %215, %224 : vector<1x128xf32>
    %c0_i32_141 = arith.constant 0 : i32
    %226 = arith.addi %2, %c0_i32_141 : i32
    %c3_i32_142 = arith.constant 3 : i32
    %227 = arith.addi %226, %c3_i32_142 : i32
    %c1_i32_143 = arith.constant 1 : i32
    %228 = arith.addi %227, %c1_i32_143 : i32
    %229 = arith.index_cast %228 : i32 to index
    %230 = memref.load %arg1[%229] : memref<72xf32, #tpu.memory_space<smem>>
    %c0_144 = arith.constant 0 : index
    %c9_145 = arith.constant 9 : index
    %c0_146 = arith.constant 0 : index
    %c0_147 = arith.constant 0 : index
    %231 = vector.load %arg4[%c0_144, %c9_145, %c0_146, %c0_147] : memref<1x16x1x128xf32, #tpu.memory_space<vmem>>, vector<1x1x1x128xf32>
    %232 = vector.shape_cast %231 : vector<1x1x1x128xf32> to vector<1x128xf32>
    %233 = vector.broadcast %230 : f32 to vector<1x128xf32>
    %234 = arith.mulf %232, %233 : vector<1x128xf32>
    %235 = arith.addf %225, %234 : vector<1x128xf32>
    %c0_i32_148 = arith.constant 0 : i32
    %236 = arith.addi %2, %c0_i32_148 : i32
    %c3_i32_149 = arith.constant 3 : i32
    %237 = arith.addi %236, %c3_i32_149 : i32
    %c2_i32_150 = arith.constant 2 : i32
    %238 = arith.addi %237, %c2_i32_150 : i32
    %239 = arith.index_cast %238 : i32 to index
    %240 = memref.load %arg1[%239] : memref<72xf32, #tpu.memory_space<smem>>
    %c0_151 = arith.constant 0 : index
    %c10_152 = arith.constant 10 : index
    %c0_153 = arith.constant 0 : index
    %c0_154 = arith.constant 0 : index
    %241 = vector.load %arg4[%c0_151, %c10_152, %c0_153, %c0_154] : memref<1x16x1x128xf32, #tpu.memory_space<vmem>>, vector<1x1x1x128xf32>
    %242 = vector.shape_cast %241 : vector<1x1x1x128xf32> to vector<1x128xf32>
    %243 = vector.broadcast %240 : f32 to vector<1x128xf32>
    %244 = arith.mulf %242, %243 : vector<1x128xf32>
    %245 = arith.addf %235, %244 : vector<1x128xf32>
    %c0_i32_155 = arith.constant 0 : i32
    %246 = arith.addi %2, %c0_i32_155 : i32
    %c6_i32_156 = arith.constant 6 : i32
    %247 = arith.addi %246, %c6_i32_156 : i32
    %c0_i32_157 = arith.constant 0 : i32
    %248 = arith.addi %247, %c0_i32_157 : i32
    %249 = arith.index_cast %248 : i32 to index
    %250 = memref.load %arg1[%249] : memref<72xf32, #tpu.memory_space<smem>>
    %c0_158 = arith.constant 0 : index
    %c12 = arith.constant 12 : index
    %c0_159 = arith.constant 0 : index
    %c0_160 = arith.constant 0 : index
    %251 = vector.load %arg4[%c0_158, %c12, %c0_159, %c0_160] : memref<1x16x1x128xf32, #tpu.memory_space<vmem>>, vector<1x1x1x128xf32>
    %252 = vector.shape_cast %251 : vector<1x1x1x128xf32> to vector<1x128xf32>
    %253 = vector.broadcast %250 : f32 to vector<1x128xf32>
    %254 = arith.mulf %252, %253 : vector<1x128xf32>
    %255 = arith.addf %245, %254 : vector<1x128xf32>
    %c0_i32_161 = arith.constant 0 : i32
    %256 = arith.addi %2, %c0_i32_161 : i32
    %c6_i32_162 = arith.constant 6 : i32
    %257 = arith.addi %256, %c6_i32_162 : i32
    %c1_i32_163 = arith.constant 1 : i32
    %258 = arith.addi %257, %c1_i32_163 : i32
    %259 = arith.index_cast %258 : i32 to index
    %260 = memref.load %arg1[%259] : memref<72xf32, #tpu.memory_space<smem>>
    %c0_164 = arith.constant 0 : index
    %c13 = arith.constant 13 : index
    %c0_165 = arith.constant 0 : index
    %c0_166 = arith.constant 0 : index
    %261 = vector.load %arg4[%c0_164, %c13, %c0_165, %c0_166] : memref<1x16x1x128xf32, #tpu.memory_space<vmem>>, vector<1x1x1x128xf32>
    %262 = vector.shape_cast %261 : vector<1x1x1x128xf32> to vector<1x128xf32>
    %263 = vector.broadcast %260 : f32 to vector<1x128xf32>
    %264 = arith.mulf %262, %263 : vector<1x128xf32>
    %265 = arith.addf %255, %264 : vector<1x128xf32>
    %c0_i32_167 = arith.constant 0 : i32
    %266 = arith.addi %2, %c0_i32_167 : i32
    %c6_i32_168 = arith.constant 6 : i32
    %267 = arith.addi %266, %c6_i32_168 : i32
    %c2_i32_169 = arith.constant 2 : i32
    %268 = arith.addi %267, %c2_i32_169 : i32
    %269 = arith.index_cast %268 : i32 to index
    %270 = memref.load %arg1[%269] : memref<72xf32, #tpu.memory_space<smem>>
    %c0_170 = arith.constant 0 : index
    %c14 = arith.constant 14 : index
    %c0_171 = arith.constant 0 : index
    %c0_172 = arith.constant 0 : index
    %271 = vector.load %arg4[%c0_170, %c14, %c0_171, %c0_172] : memref<1x16x1x128xf32, #tpu.memory_space<vmem>>, vector<1x1x1x128xf32>
    %272 = vector.shape_cast %271 : vector<1x1x1x128xf32> to vector<1x128xf32>
    %273 = vector.broadcast %270 : f32 to vector<1x128xf32>
    %274 = arith.mulf %272, %273 : vector<1x128xf32>
    %275 = arith.addf %265, %274 : vector<1x128xf32>
    %cst_173 = arith.constant 0.000000e+00 : f32
    %276 = vector.broadcast %cst_173 : f32 to vector<1x128xf32>
    %c0_i32_174 = arith.constant 0 : i32
    %277 = arith.addi %2, %c0_i32_174 : i32
    %c0_i32_175 = arith.constant 0 : i32
    %278 = arith.addi %277, %c0_i32_175 : i32
    %c0_i32_176 = arith.constant 0 : i32
    %279 = arith.addi %278, %c0_i32_176 : i32
    %280 = arith.index_cast %279 : i32 to index
    %281 = memref.load %arg1[%280] : memref<72xf32, #tpu.memory_space<smem>>
    %c0_177 = arith.constant 0 : index
    %c5_178 = arith.constant 5 : index
    %c0_179 = arith.constant 0 : index
    %c0_180 = arith.constant 0 : index
    %282 = vector.load %arg4[%c0_177, %c5_178, %c0_179, %c0_180] : memref<1x16x1x128xf32, #tpu.memory_space<vmem>>, vector<1x1x1x128xf32>
    %283 = vector.shape_cast %282 : vector<1x1x1x128xf32> to vector<1x128xf32>
    %284 = vector.broadcast %281 : f32 to vector<1x128xf32>
    %285 = arith.mulf %283, %284 : vector<1x128xf32>
    %286 = arith.addf %276, %285 : vector<1x128xf32>
    %c0_i32_181 = arith.constant 0 : i32
    %287 = arith.addi %2, %c0_i32_181 : i32
    %c0_i32_182 = arith.constant 0 : i32
    %288 = arith.addi %287, %c0_i32_182 : i32
    %c1_i32_183 = arith.constant 1 : i32
    %289 = arith.addi %288, %c1_i32_183 : i32
    %290 = arith.index_cast %289 : i32 to index
    %291 = memref.load %arg1[%290] : memref<72xf32, #tpu.memory_space<smem>>
    %c0_184 = arith.constant 0 : index
    %c6_185 = arith.constant 6 : index
    %c0_186 = arith.constant 0 : index
    %c0_187 = arith.constant 0 : index
    %292 = vector.load %arg4[%c0_184, %c6_185, %c0_186, %c0_187] : memref<1x16x1x128xf32, #tpu.memory_space<vmem>>, vector<1x1x1x128xf32>
    %293 = vector.shape_cast %292 : vector<1x1x1x128xf32> to vector<1x128xf32>
    %294 = vector.broadcast %291 : f32 to vector<1x128xf32>
    %295 = arith.mulf %293, %294 : vector<1x128xf32>
    %296 = arith.addf %286, %295 : vector<1x128xf32>
    %c0_i32_188 = arith.constant 0 : i32
    %297 = arith.addi %2, %c0_i32_188 : i32
    %c0_i32_189 = arith.constant 0 : i32
    %298 = arith.addi %297, %c0_i32_189 : i32
    %c2_i32_190 = arith.constant 2 : i32
    %299 = arith.addi %298, %c2_i32_190 : i32
    %300 = arith.index_cast %299 : i32 to index
    %301 = memref.load %arg1[%300] : memref<72xf32, #tpu.memory_space<smem>>
    %c0_191 = arith.constant 0 : index
    %c7_192 = arith.constant 7 : index
    %c0_193 = arith.constant 0 : index
    %c0_194 = arith.constant 0 : index
    %302 = vector.load %arg4[%c0_191, %c7_192, %c0_193, %c0_194] : memref<1x16x1x128xf32, #tpu.memory_space<vmem>>, vector<1x1x1x128xf32>
    %303 = vector.shape_cast %302 : vector<1x1x1x128xf32> to vector<1x128xf32>
    %304 = vector.broadcast %301 : f32 to vector<1x128xf32>
    %305 = arith.mulf %303, %304 : vector<1x128xf32>
    %306 = arith.addf %296, %305 : vector<1x128xf32>
    %c0_i32_195 = arith.constant 0 : i32
    %307 = arith.addi %2, %c0_i32_195 : i32
    %c3_i32_196 = arith.constant 3 : i32
    %308 = arith.addi %307, %c3_i32_196 : i32
    %c0_i32_197 = arith.constant 0 : i32
    %309 = arith.addi %308, %c0_i32_197 : i32
    %310 = arith.index_cast %309 : i32 to index
    %311 = memref.load %arg1[%310] : memref<72xf32, #tpu.memory_space<smem>>
    %c0_198 = arith.constant 0 : index
    %c9_199 = arith.constant 9 : index
    %c0_200 = arith.constant 0 : index
    %c0_201 = arith.constant 0 : index
    %312 = vector.load %arg4[%c0_198, %c9_199, %c0_200, %c0_201] : memref<1x16x1x128xf32, #tpu.memory_space<vmem>>, vector<1x1x1x128xf32>
    %313 = vector.shape_cast %312 : vector<1x1x1x128xf32> to vector<1x128xf32>
    %314 = vector.broadcast %311 : f32 to vector<1x128xf32>
    %315 = arith.mulf %313, %314 : vector<1x128xf32>
    %316 = arith.addf %306, %315 : vector<1x128xf32>
    %c0_i32_202 = arith.constant 0 : i32
    %317 = arith.addi %2, %c0_i32_202 : i32
    %c3_i32_203 = arith.constant 3 : i32
    %318 = arith.addi %317, %c3_i32_203 : i32
    %c1_i32_204 = arith.constant 1 : i32
    %319 = arith.addi %318, %c1_i32_204 : i32
    %320 = arith.index_cast %319 : i32 to index
    %321 = memref.load %arg1[%320] : memref<72xf32, #tpu.memory_space<smem>>
    %c0_205 = arith.constant 0 : index
    %c10_206 = arith.constant 10 : index
    %c0_207 = arith.constant 0 : index
    %c0_208 = arith.constant 0 : index
    %322 = vector.load %arg4[%c0_205, %c10_206, %c0_207, %c0_208] : memref<1x16x1x128xf32, #tpu.memory_space<vmem>>, vector<1x1x1x128xf32>
    %323 = vector.shape_cast %322 : vector<1x1x1x128xf32> to vector<1x128xf32>
    %324 = vector.broadcast %321 : f32 to vector<1x128xf32>
    %325 = arith.mulf %323, %324 : vector<1x128xf32>
    %326 = arith.addf %316, %325 : vector<1x128xf32>
    %c0_i32_209 = arith.constant 0 : i32
    %327 = arith.addi %2, %c0_i32_209 : i32
    %c3_i32_210 = arith.constant 3 : i32
    %328 = arith.addi %327, %c3_i32_210 : i32
    %c2_i32_211 = arith.constant 2 : i32
    %329 = arith.addi %328, %c2_i32_211 : i32
    %330 = arith.index_cast %329 : i32 to index
    %331 = memref.load %arg1[%330] : memref<72xf32, #tpu.memory_space<smem>>
    %c0_212 = arith.constant 0 : index
    %c11_213 = arith.constant 11 : index
    %c0_214 = arith.constant 0 : index
    %c0_215 = arith.constant 0 : index
    %332 = vector.load %arg4[%c0_212, %c11_213, %c0_214, %c0_215] : memref<1x16x1x128xf32, #tpu.memory_space<vmem>>, vector<1x1x1x128xf32>
    %333 = vector.shape_cast %332 : vector<1x1x1x128xf32> to vector<1x128xf32>
    %334 = vector.broadcast %331 : f32 to vector<1x128xf32>
    %335 = arith.mulf %333, %334 : vector<1x128xf32>
    %336 = arith.addf %326, %335 : vector<1x128xf32>
    %c0_i32_216 = arith.constant 0 : i32
    %337 = arith.addi %2, %c0_i32_216 : i32
    %c6_i32_217 = arith.constant 6 : i32
    %338 = arith.addi %337, %c6_i32_217 : i32
    %c0_i32_218 = arith.constant 0 : i32
    %339 = arith.addi %338, %c0_i32_218 : i32
    %340 = arith.index_cast %339 : i32 to index
    %341 = memref.load %arg1[%340] : memref<72xf32, #tpu.memory_space<smem>>
    %c0_219 = arith.constant 0 : index
    %c13_220 = arith.constant 13 : index
    %c0_221 = arith.constant 0 : index
    %c0_222 = arith.constant 0 : index
    %342 = vector.load %arg4[%c0_219, %c13_220, %c0_221, %c0_222] : memref<1x16x1x128xf32, #tpu.memory_space<vmem>>, vector<1x1x1x128xf32>
    %343 = vector.shape_cast %342 : vector<1x1x1x128xf32> to vector<1x128xf32>
    %344 = vector.broadcast %341 : f32 to vector<1x128xf32>
    %345 = arith.mulf %343, %344 : vector<1x128xf32>
    %346 = arith.addf %336, %345 : vector<1x128xf32>
    %c0_i32_223 = arith.constant 0 : i32
    %347 = arith.addi %2, %c0_i32_223 : i32
    %c6_i32_224 = arith.constant 6 : i32
    %348 = arith.addi %347, %c6_i32_224 : i32
    %c1_i32_225 = arith.constant 1 : i32
    %349 = arith.addi %348, %c1_i32_225 : i32
    %350 = arith.index_cast %349 : i32 to index
    %351 = memref.load %arg1[%350] : memref<72xf32, #tpu.memory_space<smem>>
    %c0_226 = arith.constant 0 : index
    %c14_227 = arith.constant 14 : index
    %c0_228 = arith.constant 0 : index
    %c0_229 = arith.constant 0 : index
    %352 = vector.load %arg4[%c0_226, %c14_227, %c0_228, %c0_229] : memref<1x16x1x128xf32, #tpu.memory_space<vmem>>, vector<1x1x1x128xf32>
    %353 = vector.shape_cast %352 : vector<1x1x1x128xf32> to vector<1x128xf32>
    %354 = vector.broadcast %351 : f32 to vector<1x128xf32>
    %355 = arith.mulf %353, %354 : vector<1x128xf32>
    %356 = arith.addf %346, %355 : vector<1x128xf32>
    %c0_i32_230 = arith.constant 0 : i32
    %357 = arith.addi %2, %c0_i32_230 : i32
    %c6_i32_231 = arith.constant 6 : i32
    %358 = arith.addi %357, %c6_i32_231 : i32
    %c2_i32_232 = arith.constant 2 : i32
    %359 = arith.addi %358, %c2_i32_232 : i32
    %360 = arith.index_cast %359 : i32 to index
    %361 = memref.load %arg1[%360] : memref<72xf32, #tpu.memory_space<smem>>
    %c0_233 = arith.constant 0 : index
    %c15 = arith.constant 15 : index
    %c0_234 = arith.constant 0 : index
    %c0_235 = arith.constant 0 : index
    %362 = vector.load %arg4[%c0_233, %c15, %c0_234, %c0_235] : memref<1x16x1x128xf32, #tpu.memory_space<vmem>>, vector<1x1x1x128xf32>
    %363 = vector.shape_cast %362 : vector<1x1x1x128xf32> to vector<1x128xf32>
    %364 = vector.broadcast %361 : f32 to vector<1x128xf32>
    %365 = arith.mulf %363, %364 : vector<1x128xf32>
    %366 = arith.addf %356, %365 : vector<1x128xf32>
    %367 = vector.shape_cast %93 : vector<1x128xf32> to vector<1x1x128xf32>
    %cst_236 = arith.constant dense<0.000000e+00> : vector<1xf32>
    %368 = vector.multi_reduction <add>, %367, %cst_236 [1, 2] : vector<1x1x128xf32> to vector<1xf32>
    %369 = vector.shape_cast %368 : vector<1xf32> to vector<1x1x1xf32>
    %370 = vector.extract %369[0, 0, 0] : f32 from vector<1x1x1xf32>
    %371 = vector.broadcast %370 : f32 to vector<1x1xf32>
    %372 = vector.shape_cast %184 : vector<1x128xf32> to vector<1x1x128xf32>
    %cst_237 = arith.constant dense<0.000000e+00> : vector<1xf32>
    %373 = vector.multi_reduction <add>, %372, %cst_237 [1, 2] : vector<1x1x128xf32> to vector<1xf32>
    %374 = vector.shape_cast %373 : vector<1xf32> to vector<1x1x1xf32>
    %375 = vector.extract %374[0, 0, 0] : f32 from vector<1x1x1xf32>
    %376 = vector.broadcast %375 : f32 to vector<1x1xf32>
    %377 = arith.addf %371, %376 : vector<1x1xf32>
    %378 = vector.shape_cast %275 : vector<1x128xf32> to vector<1x1x128xf32>
    %cst_238 = arith.constant dense<0.000000e+00> : vector<1xf32>
    %379 = vector.multi_reduction <add>, %378, %cst_238 [1, 2] : vector<1x1x128xf32> to vector<1xf32>
    %380 = vector.shape_cast %379 : vector<1xf32> to vector<1x1x1xf32>
    %381 = vector.extract %380[0, 0, 0] : f32 from vector<1x1x1xf32>
    %382 = vector.broadcast %381 : f32 to vector<1x1xf32>
    %383 = arith.addf %377, %382 : vector<1x1xf32>
    %384 = vector.shape_cast %366 : vector<1x128xf32> to vector<1x1x128xf32>
    %cst_239 = arith.constant dense<0.000000e+00> : vector<1xf32>
    %385 = vector.multi_reduction <add>, %384, %cst_239 [1, 2] : vector<1x1x128xf32> to vector<1xf32>
    %386 = vector.shape_cast %385 : vector<1xf32> to vector<1x1x1xf32>
    %387 = vector.extract %386[0, 0, 0] : f32 from vector<1x1x1xf32>
    %388 = vector.broadcast %387 : f32 to vector<1x1xf32>
    %389 = arith.addf %383, %388 : vector<1x1xf32>
    %cst_240 = arith.constant 0.001953125 : f32
    %390 = vector.broadcast %cst_240 : f32 to vector<1x1xf32>
    %391 = arith.mulf %389, %390 : vector<1x1xf32>
    %cst_241 = arith.constant 0.000000e+00 : f32
    %392 = vector.broadcast %cst_241 : f32 to vector<1x1xf32>
    %393 = vector.broadcast %391 : vector<1x1xf32> to vector<1x128xf32>
    %394 = arith.subf %93, %393 : vector<1x128xf32>
    %395 = arith.mulf %394, %394 : vector<1x128xf32>
    %396 = vector.shape_cast %395 : vector<1x128xf32> to vector<1x1x128xf32>
    %cst_242 = arith.constant dense<0.000000e+00> : vector<1xf32>
    %397 = vector.multi_reduction <add>, %396, %cst_242 [1, 2] : vector<1x1x128xf32> to vector<1xf32>
    %398 = vector.shape_cast %397 : vector<1xf32> to vector<1x1x1xf32>
    %399 = vector.extract %398[0, 0, 0] : f32 from vector<1x1x1xf32>
    %400 = vector.broadcast %399 : f32 to vector<1x1xf32>
    %401 = arith.addf %392, %400 : vector<1x1xf32>
    %402 = vector.broadcast %391 : vector<1x1xf32> to vector<1x128xf32>
    %403 = arith.subf %184, %402 : vector<1x128xf32>
    %404 = arith.mulf %403, %403 : vector<1x128xf32>
    %405 = vector.shape_cast %404 : vector<1x128xf32> to vector<1x1x128xf32>
    %cst_243 = arith.constant dense<0.000000e+00> : vector<1xf32>
    %406 = vector.multi_reduction <add>, %405, %cst_243 [1, 2] : vector<1x1x128xf32> to vector<1xf32>
    %407 = vector.shape_cast %406 : vector<1xf32> to vector<1x1x1xf32>
    %408 = vector.extract %407[0, 0, 0] : f32 from vector<1x1x1xf32>
    %409 = vector.broadcast %408 : f32 to vector<1x1xf32>
    %410 = arith.addf %401, %409 : vector<1x1xf32>
    %411 = vector.broadcast %391 : vector<1x1xf32> to vector<1x128xf32>
    %412 = arith.subf %275, %411 : vector<1x128xf32>
    %413 = arith.mulf %412, %412 : vector<1x128xf32>
    %414 = vector.shape_cast %413 : vector<1x128xf32> to vector<1x1x128xf32>
    %cst_244 = arith.constant dense<0.000000e+00> : vector<1xf32>
    %415 = vector.multi_reduction <add>, %414, %cst_244 [1, 2] : vector<1x1x128xf32> to vector<1xf32>
    %416 = vector.shape_cast %415 : vector<1xf32> to vector<1x1x1xf32>
    %417 = vector.extract %416[0, 0, 0] : f32 from vector<1x1x1xf32>
    %418 = vector.broadcast %417 : f32 to vector<1x1xf32>
    %419 = arith.addf %410, %418 : vector<1x1xf32>
    %420 = vector.broadcast %391 : vector<1x1xf32> to vector<1x128xf32>
    %421 = arith.subf %366, %420 : vector<1x128xf32>
    %422 = arith.mulf %421, %421 : vector<1x128xf32>
    %423 = vector.shape_cast %422 : vector<1x128xf32> to vector<1x1x128xf32>
    %cst_245 = arith.constant dense<0.000000e+00> : vector<1xf32>
    %424 = vector.multi_reduction <add>, %423, %cst_245 [1, 2] : vector<1x1x128xf32> to vector<1xf32>
    %425 = vector.shape_cast %424 : vector<1xf32> to vector<1x1x1xf32>
    %426 = vector.extract %425[0, 0, 0] : f32 from vector<1x1x1xf32>
    %427 = vector.broadcast %426 : f32 to vector<1x1xf32>
    %428 = arith.addf %419, %427 : vector<1x1xf32>
    %cst_246 = arith.constant 0.001953125 : f32
    %429 = vector.broadcast %cst_246 : f32 to vector<1x1xf32>
    %430 = arith.mulf %428, %429 : vector<1x1xf32>
    %431 = arith.index_cast %1 : i32 to index
    %432 = memref.load %arg2[%431] : memref<8xf32, #tpu.memory_space<smem>>
    %cst_247 = arith.constant 9.99999974E-6 : f32
    %433 = vector.broadcast %cst_247 : f32 to vector<1x1xf32>
    %434 = arith.addf %430, %433 : vector<1x1xf32>
    %435 = math.rsqrt %434 : vector<1x1xf32>
    %436 = vector.broadcast %432 : f32 to vector<1x1xf32>
    %437 = arith.mulf %436, %435 : vector<1x1xf32>
    %438 = arith.index_cast %1 : i32 to index
    %439 = memref.load %arg3[%438] : memref<8xf32, #tpu.memory_space<smem>>
    %440 = arith.mulf %391, %437 : vector<1x1xf32>
    %441 = vector.broadcast %439 : f32 to vector<1x1xf32>
    %442 = arith.subf %441, %440 : vector<1x1xf32>
    %443 = vector.broadcast %437 : vector<1x1xf32> to vector<1x128xf32>
    %444 = arith.mulf %93, %443 : vector<1x128xf32>
    %445 = vector.broadcast %442 : vector<1x1xf32> to vector<1x128xf32>
    %446 = arith.addf %444, %445 : vector<1x128xf32>
    %cst_248 = arith.constant 0.000000e+00 : f32
    %447 = vector.broadcast %cst_248 : f32 to vector<1x128xf32>
    %448 = arith.maximumf %446, %447 : vector<1x128xf32>
    %449 = vector.broadcast %437 : vector<1x1xf32> to vector<1x128xf32>
    %450 = arith.mulf %184, %449 : vector<1x128xf32>
    %451 = vector.broadcast %442 : vector<1x1xf32> to vector<1x128xf32>
    %452 = arith.addf %450, %451 : vector<1x128xf32>
    %cst_249 = arith.constant 0.000000e+00 : f32
    %453 = vector.broadcast %cst_249 : f32 to vector<1x128xf32>
    %454 = arith.maximumf %452, %453 : vector<1x128xf32>
    %455 = arith.maximumf %448, %454 : vector<1x128xf32>
    %456 = vector.broadcast %437 : vector<1x1xf32> to vector<1x128xf32>
    %457 = arith.mulf %275, %456 : vector<1x128xf32>
    %458 = vector.broadcast %442 : vector<1x1xf32> to vector<1x128xf32>
    %459 = arith.addf %457, %458 : vector<1x128xf32>
    %cst_250 = arith.constant 0.000000e+00 : f32
    %460 = vector.broadcast %cst_250 : f32 to vector<1x128xf32>
    %461 = arith.maximumf %459, %460 : vector<1x128xf32>
    %462 = arith.maximumf %455, %461 : vector<1x128xf32>
    %463 = vector.broadcast %437 : vector<1x1xf32> to vector<1x128xf32>
    %464 = arith.mulf %366, %463 : vector<1x128xf32>
    %465 = vector.broadcast %442 : vector<1x1xf32> to vector<1x128xf32>
    %466 = arith.addf %464, %465 : vector<1x128xf32>
    %cst_251 = arith.constant 0.000000e+00 : f32
    %467 = vector.broadcast %cst_251 : f32 to vector<1x128xf32>
    %468 = arith.maximumf %466, %467 : vector<1x128xf32>
    %469 = arith.maximumf %462, %468 : vector<1x128xf32>
    %c0_252 = arith.constant 0 : index
    %c0_253 = arith.constant 0 : index
    %c0_254 = arith.constant 0 : index
    %c0_255 = arith.constant 0 : index
    %470 = vector.load %arg5[%c0_252, %c0_253, %c0_254, %c0_255] : memref<1x2x1x128xf32, #tpu.memory_space<vmem>>, vector<1x1x1x128xf32>
    %471 = vector.shape_cast %470 : vector<1x1x1x128xf32> to vector<1x128xf32>
    %472 = vector.shape_cast %469 : vector<1x128xf32> to vector<1x1x1x128xf32>
    tpu.vector_store %arg5[%c0_252, %c0_253, %c0_254, %c0_255], %472 {strides = array<i32>} : memref<1x2x1x128xf32, #tpu.memory_space<vmem>>, vector<1x1x1x128xf32>,
    %c2_i32_256 = arith.constant 2 : i32
    %473 = arith.muli %arg0, %c2_i32_256 : i32
    %c1_i32_257 = arith.constant 1 : i32
    %474 = arith.addi %473, %c1_i32_257 : i32
    %c9_i32_258 = arith.constant 9 : i32
    %475 = arith.muli %474, %c9_i32_258 : i32
    %cst_259 = arith.constant 0.000000e+00 : f32
    %476 = vector.broadcast %cst_259 : f32 to vector<1x128xf32>
    %c0_i32_260 = arith.constant 0 : i32
    %477 = arith.addi %475, %c0_i32_260 : i32
    %c0_i32_261 = arith.constant 0 : i32
    %478 = arith.addi %477, %c0_i32_261 : i32
    %c0_i32_262 = arith.constant 0 : i32
    %479 = arith.addi %478, %c0_i32_262 : i32
    %480 = arith.index_cast %479 : i32 to index
    %481 = memref.load %arg1[%480] : memref<72xf32, #tpu.memory_space<smem>>
    %c0_263 = arith.constant 0 : index
    %c0_264 = arith.constant 0 : index
    %c0_265 = arith.constant 0 : index
    %c0_266 = arith.constant 0 : index
    %482 = vector.load %arg4[%c0_263, %c0_264, %c0_265, %c0_266] : memref<1x16x1x128xf32, #tpu.memory_space<vmem>>, vector<1x1x1x128xf32>
    %483 = vector.shape_cast %482 : vector<1x1x1x128xf32> to vector<1x128xf32>
    %484 = vector.broadcast %481 : f32 to vector<1x128xf32>
    %485 = arith.mulf %483, %484 : vector<1x128xf32>
    %486 = arith.addf %476, %485 : vector<1x128xf32>
    %c0_i32_267 = arith.constant 0 : i32
    %487 = arith.addi %475, %c0_i32_267 : i32
    %c0_i32_268 = arith.constant 0 : i32
    %488 = arith.addi %487, %c0_i32_268 : i32
    %c1_i32_269 = arith.constant 1 : i32
    %489 = arith.addi %488, %c1_i32_269 : i32
    %490 = arith.index_cast %489 : i32 to index
    %491 = memref.load %arg1[%490] : memref<72xf32, #tpu.memory_space<smem>>
    %c0_270 = arith.constant 0 : index
    %c1_271 = arith.constant 1 : index
    %c0_272 = arith.constant 0 : index
    %c0_273 = arith.constant 0 : index
    %492 = vector.load %arg4[%c0_270, %c1_271, %c0_272, %c0_273] : memref<1x16x1x128xf32, #tpu.memory_space<vmem>>, vector<1x1x1x128xf32>
    %493 = vector.shape_cast %492 : vector<1x1x1x128xf32> to vector<1x128xf32>
    %494 = vector.broadcast %491 : f32 to vector<1x128xf32>
    %495 = arith.mulf %493, %494 : vector<1x128xf32>
    %496 = arith.addf %486, %495 : vector<1x128xf32>
    %c0_i32_274 = arith.constant 0 : i32
    %497 = arith.addi %475, %c0_i32_274 : i32
    %c0_i32_275 = arith.constant 0 : i32
    %498 = arith.addi %497, %c0_i32_275 : i32
    %c2_i32_276 = arith.constant 2 : i32
    %499 = arith.addi %498, %c2_i32_276 : i32
    %500 = arith.index_cast %499 : i32 to index
    %501 = memref.load %arg1[%500] : memref<72xf32, #tpu.memory_space<smem>>
    %c0_277 = arith.constant 0 : index
    %c2_278 = arith.constant 2 : index
    %c0_279 = arith.constant 0 : index
    %c0_280 = arith.constant 0 : index
    %502 = vector.load %arg4[%c0_277, %c2_278, %c0_279, %c0_280] : memref<1x16x1x128xf32, #tpu.memory_space<vmem>>, vector<1x1x1x128xf32>
    %503 = vector.shape_cast %502 : vector<1x1x1x128xf32> to vector<1x128xf32>
    %504 = vector.broadcast %501 : f32 to vector<1x128xf32>
    %505 = arith.mulf %503, %504 : vector<1x128xf32>
    %506 = arith.addf %496, %505 : vector<1x128xf32>
    %c0_i32_281 = arith.constant 0 : i32
    %507 = arith.addi %475, %c0_i32_281 : i32
    %c3_i32_282 = arith.constant 3 : i32
    %508 = arith.addi %507, %c3_i32_282 : i32
    %c0_i32_283 = arith.constant 0 : i32
    %509 = arith.addi %508, %c0_i32_283 : i32
    %510 = arith.index_cast %509 : i32 to index
    %511 = memref.load %arg1[%510] : memref<72xf32, #tpu.memory_space<smem>>
    %c0_284 = arith.constant 0 : index
    %c4_285 = arith.constant 4 : index
    %c0_286 = arith.constant 0 : index
    %c0_287 = arith.constant 0 : index
    %512 = vector.load %arg4[%c0_284, %c4_285, %c0_286, %c0_287] : memref<1x16x1x128xf32, #tpu.memory_space<vmem>>, vector<1x1x1x128xf32>
    %513 = vector.shape_cast %512 : vector<1x1x1x128xf32> to vector<1x128xf32>
    %514 = vector.broadcast %511 : f32 to vector<1x128xf32>
    %515 = arith.mulf %513, %514 : vector<1x128xf32>
    %516 = arith.addf %506, %515 : vector<1x128xf32>
    %c0_i32_288 = arith.constant 0 : i32
    %517 = arith.addi %475, %c0_i32_288 : i32
    %c3_i32_289 = arith.constant 3 : i32
    %518 = arith.addi %517, %c3_i32_289 : i32
    %c1_i32_290 = arith.constant 1 : i32
    %519 = arith.addi %518, %c1_i32_290 : i32
    %520 = arith.index_cast %519 : i32 to index
    %521 = memref.load %arg1[%520] : memref<72xf32, #tpu.memory_space<smem>>
    %c0_291 = arith.constant 0 : index
    %c5_292 = arith.constant 5 : index
    %c0_293 = arith.constant 0 : index
    %c0_294 = arith.constant 0 : index
    %522 = vector.load %arg4[%c0_291, %c5_292, %c0_293, %c0_294] : memref<1x16x1x128xf32, #tpu.memory_space<vmem>>, vector<1x1x1x128xf32>
    %523 = vector.shape_cast %522 : vector<1x1x1x128xf32> to vector<1x128xf32>
    %524 = vector.broadcast %521 : f32 to vector<1x128xf32>
    %525 = arith.mulf %523, %524 : vector<1x128xf32>
    %526 = arith.addf %516, %525 : vector<1x128xf32>
    %c0_i32_295 = arith.constant 0 : i32
    %527 = arith.addi %475, %c0_i32_295 : i32
    %c3_i32_296 = arith.constant 3 : i32
    %528 = arith.addi %527, %c3_i32_296 : i32
    %c2_i32_297 = arith.constant 2 : i32
    %529 = arith.addi %528, %c2_i32_297 : i32
    %530 = arith.index_cast %529 : i32 to index
    %531 = memref.load %arg1[%530] : memref<72xf32, #tpu.memory_space<smem>>
    %c0_298 = arith.constant 0 : index
    %c6_299 = arith.constant 6 : index
    %c0_300 = arith.constant 0 : index
    %c0_301 = arith.constant 0 : index
    %532 = vector.load %arg4[%c0_298, %c6_299, %c0_300, %c0_301] : memref<1x16x1x128xf32, #tpu.memory_space<vmem>>, vector<1x1x1x128xf32>
    %533 = vector.shape_cast %532 : vector<1x1x1x128xf32> to vector<1x128xf32>
    %534 = vector.broadcast %531 : f32 to vector<1x128xf32>
    %535 = arith.mulf %533, %534 : vector<1x128xf32>
    %536 = arith.addf %526, %535 : vector<1x128xf32>
    %c0_i32_302 = arith.constant 0 : i32
    %537 = arith.addi %475, %c0_i32_302 : i32
    %c6_i32_303 = arith.constant 6 : i32
    %538 = arith.addi %537, %c6_i32_303 : i32
    %c0_i32_304 = arith.constant 0 : i32
    %539 = arith.addi %538, %c0_i32_304 : i32
    %540 = arith.index_cast %539 : i32 to index
    %541 = memref.load %arg1[%540] : memref<72xf32, #tpu.memory_space<smem>>
    %c0_305 = arith.constant 0 : index
    %c8_306 = arith.constant 8 : index
    %c0_307 = arith.constant 0 : index
    %c0_308 = arith.constant 0 : index
    %542 = vector.load %arg4[%c0_305, %c8_306, %c0_307, %c0_308] : memref<1x16x1x128xf32, #tpu.memory_space<vmem>>, vector<1x1x1x128xf32>
    %543 = vector.shape_cast %542 : vector<1x1x1x128xf32> to vector<1x128xf32>
    %544 = vector.broadcast %541 : f32 to vector<1x128xf32>
    %545 = arith.mulf %543, %544 : vector<1x128xf32>
    %546 = arith.addf %536, %545 : vector<1x128xf32>
    %c0_i32_309 = arith.constant 0 : i32
    %547 = arith.addi %475, %c0_i32_309 : i32
    %c6_i32_310 = arith.constant 6 : i32
    %548 = arith.addi %547, %c6_i32_310 : i32
    %c1_i32_311 = arith.constant 1 : i32
    %549 = arith.addi %548, %c1_i32_311 : i32
    %550 = arith.index_cast %549 : i32 to index
    %551 = memref.load %arg1[%550] : memref<72xf32, #tpu.memory_space<smem>>
    %c0_312 = arith.constant 0 : index
    %c9_313 = arith.constant 9 : index
    %c0_314 = arith.constant 0 : index
    %c0_315 = arith.constant 0 : index
    %552 = vector.load %arg4[%c0_312, %c9_313, %c0_314, %c0_315] : memref<1x16x1x128xf32, #tpu.memory_space<vmem>>, vector<1x1x1x128xf32>
    %553 = vector.shape_cast %552 : vector<1x1x1x128xf32> to vector<1x128xf32>
    %554 = vector.broadcast %551 : f32 to vector<1x128xf32>
    %555 = arith.mulf %553, %554 : vector<1x128xf32>
    %556 = arith.addf %546, %555 : vector<1x128xf32>
    %c0_i32_316 = arith.constant 0 : i32
    %557 = arith.addi %475, %c0_i32_316 : i32
    %c6_i32_317 = arith.constant 6 : i32
    %558 = arith.addi %557, %c6_i32_317 : i32
    %c2_i32_318 = arith.constant 2 : i32
    %559 = arith.addi %558, %c2_i32_318 : i32
    %560 = arith.index_cast %559 : i32 to index
    %561 = memref.load %arg1[%560] : memref<72xf32, #tpu.memory_space<smem>>
    %c0_319 = arith.constant 0 : index
    %c10_320 = arith.constant 10 : index
    %c0_321 = arith.constant 0 : index
    %c0_322 = arith.constant 0 : index
    %562 = vector.load %arg4[%c0_319, %c10_320, %c0_321, %c0_322] : memref<1x16x1x128xf32, #tpu.memory_space<vmem>>, vector<1x1x1x128xf32>
    %563 = vector.shape_cast %562 : vector<1x1x1x128xf32> to vector<1x128xf32>
    %564 = vector.broadcast %561 : f32 to vector<1x128xf32>
    %565 = arith.mulf %563, %564 : vector<1x128xf32>
    %566 = arith.addf %556, %565 : vector<1x128xf32>
    %cst_323 = arith.constant 0.000000e+00 : f32
    %567 = vector.broadcast %cst_323 : f32 to vector<1x128xf32>
    %c0_i32_324 = arith.constant 0 : i32
    %568 = arith.addi %475, %c0_i32_324 : i32
    %c0_i32_325 = arith.constant 0 : i32
    %569 = arith.addi %568, %c0_i32_325 : i32
    %c0_i32_326 = arith.constant 0 : i32
    %570 = arith.addi %569, %c0_i32_326 : i32
    %571 = arith.index_cast %570 : i32 to index
    %572 = memref.load %arg1[%571] : memref<72xf32, #tpu.memory_space<smem>>
    %c0_327 = arith.constant 0 : index
    %c1_328 = arith.constant 1 : index
    %c0_329 = arith.constant 0 : index
    %c0_330 = arith.constant 0 : index
    %573 = vector.load %arg4[%c0_327, %c1_328, %c0_329, %c0_330] : memref<1x16x1x128xf32, #tpu.memory_space<vmem>>, vector<1x1x1x128xf32>
    %574 = vector.shape_cast %573 : vector<1x1x1x128xf32> to vector<1x128xf32>
    %575 = vector.broadcast %572 : f32 to vector<1x128xf32>
    %576 = arith.mulf %574, %575 : vector<1x128xf32>
    %577 = arith.addf %567, %576 : vector<1x128xf32>
    %c0_i32_331 = arith.constant 0 : i32
    %578 = arith.addi %475, %c0_i32_331 : i32
    %c0_i32_332 = arith.constant 0 : i32
    %579 = arith.addi %578, %c0_i32_332 : i32
    %c1_i32_333 = arith.constant 1 : i32
    %580 = arith.addi %579, %c1_i32_333 : i32
    %581 = arith.index_cast %580 : i32 to index
    %582 = memref.load %arg1[%581] : memref<72xf32, #tpu.memory_space<smem>>
    %c0_334 = arith.constant 0 : index
    %c2_335 = arith.constant 2 : index
    %c0_336 = arith.constant 0 : index
    %c0_337 = arith.constant 0 : index
    %583 = vector.load %arg4[%c0_334, %c2_335, %c0_336, %c0_337] : memref<1x16x1x128xf32, #tpu.memory_space<vmem>>, vector<1x1x1x128xf32>
    %584 = vector.shape_cast %583 : vector<1x1x1x128xf32> to vector<1x128xf32>
    %585 = vector.broadcast %582 : f32 to vector<1x128xf32>
    %586 = arith.mulf %584, %585 : vector<1x128xf32>
    %587 = arith.addf %577, %586 : vector<1x128xf32>
    %c0_i32_338 = arith.constant 0 : i32
    %588 = arith.addi %475, %c0_i32_338 : i32
    %c0_i32_339 = arith.constant 0 : i32
    %589 = arith.addi %588, %c0_i32_339 : i32
    %c2_i32_340 = arith.constant 2 : i32
    %590 = arith.addi %589, %c2_i32_340 : i32
    %591 = arith.index_cast %590 : i32 to index
    %592 = memref.load %arg1[%591] : memref<72xf32, #tpu.memory_space<smem>>
    %c0_341 = arith.constant 0 : index
    %c3_342 = arith.constant 3 : index
    %c0_343 = arith.constant 0 : index
    %c0_344 = arith.constant 0 : index
    %593 = vector.load %arg4[%c0_341, %c3_342, %c0_343, %c0_344] : memref<1x16x1x128xf32, #tpu.memory_space<vmem>>, vector<1x1x1x128xf32>
    %594 = vector.shape_cast %593 : vector<1x1x1x128xf32> to vector<1x128xf32>
    %595 = vector.broadcast %592 : f32 to vector<1x128xf32>
    %596 = arith.mulf %594, %595 : vector<1x128xf32>
    %597 = arith.addf %587, %596 : vector<1x128xf32>
    %c0_i32_345 = arith.constant 0 : i32
    %598 = arith.addi %475, %c0_i32_345 : i32
    %c3_i32_346 = arith.constant 3 : i32
    %599 = arith.addi %598, %c3_i32_346 : i32
    %c0_i32_347 = arith.constant 0 : i32
    %600 = arith.addi %599, %c0_i32_347 : i32
    %601 = arith.index_cast %600 : i32 to index
    %602 = memref.load %arg1[%601] : memref<72xf32, #tpu.memory_space<smem>>
    %c0_348 = arith.constant 0 : index
    %c5_349 = arith.constant 5 : index
    %c0_350 = arith.constant 0 : index
    %c0_351 = arith.constant 0 : index
    %603 = vector.load %arg4[%c0_348, %c5_349, %c0_350, %c0_351] : memref<1x16x1x128xf32, #tpu.memory_space<vmem>>, vector<1x1x1x128xf32>
    %604 = vector.shape_cast %603 : vector<1x1x1x128xf32> to vector<1x128xf32>
    %605 = vector.broadcast %602 : f32 to vector<1x128xf32>
    %606 = arith.mulf %604, %605 : vector<1x128xf32>
    %607 = arith.addf %597, %606 : vector<1x128xf32>
    %c0_i32_352 = arith.constant 0 : i32
    %608 = arith.addi %475, %c0_i32_352 : i32
    %c3_i32_353 = arith.constant 3 : i32
    %609 = arith.addi %608, %c3_i32_353 : i32
    %c1_i32_354 = arith.constant 1 : i32
    %610 = arith.addi %609, %c1_i32_354 : i32
    %611 = arith.index_cast %610 : i32 to index
    %612 = memref.load %arg1[%611] : memref<72xf32, #tpu.memory_space<smem>>
    %c0_355 = arith.constant 0 : index
    %c6_356 = arith.constant 6 : index
    %c0_357 = arith.constant 0 : index
    %c0_358 = arith.constant 0 : index
    %613 = vector.load %arg4[%c0_355, %c6_356, %c0_357, %c0_358] : memref<1x16x1x128xf32, #tpu.memory_space<vmem>>, vector<1x1x1x128xf32>
    %614 = vector.shape_cast %613 : vector<1x1x1x128xf32> to vector<1x128xf32>
    %615 = vector.broadcast %612 : f32 to vector<1x128xf32>
    %616 = arith.mulf %614, %615 : vector<1x128xf32>
    %617 = arith.addf %607, %616 : vector<1x128xf32>
    %c0_i32_359 = arith.constant 0 : i32
    %618 = arith.addi %475, %c0_i32_359 : i32
    %c3_i32_360 = arith.constant 3 : i32
    %619 = arith.addi %618, %c3_i32_360 : i32
    %c2_i32_361 = arith.constant 2 : i32
    %620 = arith.addi %619, %c2_i32_361 : i32
    %621 = arith.index_cast %620 : i32 to index
    %622 = memref.load %arg1[%621] : memref<72xf32, #tpu.memory_space<smem>>
    %c0_362 = arith.constant 0 : index
    %c7_363 = arith.constant 7 : index
    %c0_364 = arith.constant 0 : index
    %c0_365 = arith.constant 0 : index
    %623 = vector.load %arg4[%c0_362, %c7_363, %c0_364, %c0_365] : memref<1x16x1x128xf32, #tpu.memory_space<vmem>>, vector<1x1x1x128xf32>
    %624 = vector.shape_cast %623 : vector<1x1x1x128xf32> to vector<1x128xf32>
    %625 = vector.broadcast %622 : f32 to vector<1x128xf32>
    %626 = arith.mulf %624, %625 : vector<1x128xf32>
    %627 = arith.addf %617, %626 : vector<1x128xf32>
    %c0_i32_366 = arith.constant 0 : i32
    %628 = arith.addi %475, %c0_i32_366 : i32
    %c6_i32_367 = arith.constant 6 : i32
    %629 = arith.addi %628, %c6_i32_367 : i32
    %c0_i32_368 = arith.constant 0 : i32
    %630 = arith.addi %629, %c0_i32_368 : i32
    %631 = arith.index_cast %630 : i32 to index
    %632 = memref.load %arg1[%631] : memref<72xf32, #tpu.memory_space<smem>>
    %c0_369 = arith.constant 0 : index
    %c9_370 = arith.constant 9 : index
    %c0_371 = arith.constant 0 : index
    %c0_372 = arith.constant 0 : index
    %633 = vector.load %arg4[%c0_369, %c9_370, %c0_371, %c0_372] : memref<1x16x1x128xf32, #tpu.memory_space<vmem>>, vector<1x1x1x128xf32>
    %634 = vector.shape_cast %633 : vector<1x1x1x128xf32> to vector<1x128xf32>
    %635 = vector.broadcast %632 : f32 to vector<1x128xf32>
    %636 = arith.mulf %634, %635 : vector<1x128xf32>
    %637 = arith.addf %627, %636 : vector<1x128xf32>
    %c0_i32_373 = arith.constant 0 : i32
    %638 = arith.addi %475, %c0_i32_373 : i32
    %c6_i32_374 = arith.constant 6 : i32
    %639 = arith.addi %638, %c6_i32_374 : i32
    %c1_i32_375 = arith.constant 1 : i32
    %640 = arith.addi %639, %c1_i32_375 : i32
    %641 = arith.index_cast %640 : i32 to index
    %642 = memref.load %arg1[%641] : memref<72xf32, #tpu.memory_space<smem>>
    %c0_376 = arith.constant 0 : index
    %c10_377 = arith.constant 10 : index
    %c0_378 = arith.constant 0 : index
    %c0_379 = arith.constant 0 : index
    %643 = vector.load %arg4[%c0_376, %c10_377, %c0_378, %c0_379] : memref<1x16x1x128xf32, #tpu.memory_space<vmem>>, vector<1x1x1x128xf32>
    %644 = vector.shape_cast %643 : vector<1x1x1x128xf32> to vector<1x128xf32>
    %645 = vector.broadcast %642 : f32 to vector<1x128xf32>
    %646 = arith.mulf %644, %645 : vector<1x128xf32>
    %647 = arith.addf %637, %646 : vector<1x128xf32>
    %c0_i32_380 = arith.constant 0 : i32
    %648 = arith.addi %475, %c0_i32_380 : i32
    %c6_i32_381 = arith.constant 6 : i32
    %649 = arith.addi %648, %c6_i32_381 : i32
    %c2_i32_382 = arith.constant 2 : i32
    %650 = arith.addi %649, %c2_i32_382 : i32
    %651 = arith.index_cast %650 : i32 to index
    %652 = memref.load %arg1[%651] : memref<72xf32, #tpu.memory_space<smem>>
    %c0_383 = arith.constant 0 : index
    %c11_384 = arith.constant 11 : index
    %c0_385 = arith.constant 0 : index
    %c0_386 = arith.constant 0 : index
    %653 = vector.load %arg4[%c0_383, %c11_384, %c0_385, %c0_386] : memref<1x16x1x128xf32, #tpu.memory_space<vmem>>, vector<1x1x1x128xf32>
    %654 = vector.shape_cast %653 : vector<1x1x1x128xf32> to vector<1x128xf32>
    %655 = vector.broadcast %652 : f32 to vector<1x128xf32>
    %656 = arith.mulf %654, %655 : vector<1x128xf32>
    %657 = arith.addf %647, %656 : vector<1x128xf32>
    %cst_387 = arith.constant 0.000000e+00 : f32
    %658 = vector.broadcast %cst_387 : f32 to vector<1x128xf32>
    %c0_i32_388 = arith.constant 0 : i32
    %659 = arith.addi %475, %c0_i32_388 : i32
    %c0_i32_389 = arith.constant 0 : i32
    %660 = arith.addi %659, %c0_i32_389 : i32
    %c0_i32_390 = arith.constant 0 : i32
    %661 = arith.addi %660, %c0_i32_390 : i32
    %662 = arith.index_cast %661 : i32 to index
    %663 = memref.load %arg1[%662] : memref<72xf32, #tpu.memory_space<smem>>
    %c0_391 = arith.constant 0 : index
    %c4_392 = arith.constant 4 : index
    %c0_393 = arith.constant 0 : index
    %c0_394 = arith.constant 0 : index
    %664 = vector.load %arg4[%c0_391, %c4_392, %c0_393, %c0_394] : memref<1x16x1x128xf32, #tpu.memory_space<vmem>>, vector<1x1x1x128xf32>
    %665 = vector.shape_cast %664 : vector<1x1x1x128xf32> to vector<1x128xf32>
    %666 = vector.broadcast %663 : f32 to vector<1x128xf32>
    %667 = arith.mulf %665, %666 : vector<1x128xf32>
    %668 = arith.addf %658, %667 : vector<1x128xf32>
    %c0_i32_395 = arith.constant 0 : i32
    %669 = arith.addi %475, %c0_i32_395 : i32
    %c0_i32_396 = arith.constant 0 : i32
    %670 = arith.addi %669, %c0_i32_396 : i32
    %c1_i32_397 = arith.constant 1 : i32
    %671 = arith.addi %670, %c1_i32_397 : i32
    %672 = arith.index_cast %671 : i32 to index
    %673 = memref.load %arg1[%672] : memref<72xf32, #tpu.memory_space<smem>>
    %c0_398 = arith.constant 0 : index
    %c5_399 = arith.constant 5 : index
    %c0_400 = arith.constant 0 : index
    %c0_401 = arith.constant 0 : index
    %674 = vector.load %arg4[%c0_398, %c5_399, %c0_400, %c0_401] : memref<1x16x1x128xf32, #tpu.memory_space<vmem>>, vector<1x1x1x128xf32>
    %675 = vector.shape_cast %674 : vector<1x1x1x128xf32> to vector<1x128xf32>
    %676 = vector.broadcast %673 : f32 to vector<1x128xf32>
    %677 = arith.mulf %675, %676 : vector<1x128xf32>
    %678 = arith.addf %668, %677 : vector<1x128xf32>
    %c0_i32_402 = arith.constant 0 : i32
    %679 = arith.addi %475, %c0_i32_402 : i32
    %c0_i32_403 = arith.constant 0 : i32
    %680 = arith.addi %679, %c0_i32_403 : i32
    %c2_i32_404 = arith.constant 2 : i32
    %681 = arith.addi %680, %c2_i32_404 : i32
    %682 = arith.index_cast %681 : i32 to index
    %683 = memref.load %arg1[%682] : memref<72xf32, #tpu.memory_space<smem>>
    %c0_405 = arith.constant 0 : index
    %c6_406 = arith.constant 6 : index
    %c0_407 = arith.constant 0 : index
    %c0_408 = arith.constant 0 : index
    %684 = vector.load %arg4[%c0_405, %c6_406, %c0_407, %c0_408] : memref<1x16x1x128xf32, #tpu.memory_space<vmem>>, vector<1x1x1x128xf32>
    %685 = vector.shape_cast %684 : vector<1x1x1x128xf32> to vector<1x128xf32>
    %686 = vector.broadcast %683 : f32 to vector<1x128xf32>
    %687 = arith.mulf %685, %686 : vector<1x128xf32>
    %688 = arith.addf %678, %687 : vector<1x128xf32>
    %c0_i32_409 = arith.constant 0 : i32
    %689 = arith.addi %475, %c0_i32_409 : i32
    %c3_i32_410 = arith.constant 3 : i32
    %690 = arith.addi %689, %c3_i32_410 : i32
    %c0_i32_411 = arith.constant 0 : i32
    %691 = arith.addi %690, %c0_i32_411 : i32
    %692 = arith.index_cast %691 : i32 to index
    %693 = memref.load %arg1[%692] : memref<72xf32, #tpu.memory_space<smem>>
    %c0_412 = arith.constant 0 : index
    %c8_413 = arith.constant 8 : index
    %c0_414 = arith.constant 0 : index
    %c0_415 = arith.constant 0 : index
    %694 = vector.load %arg4[%c0_412, %c8_413, %c0_414, %c0_415] : memref<1x16x1x128xf32, #tpu.memory_space<vmem>>, vector<1x1x1x128xf32>
    %695 = vector.shape_cast %694 : vector<1x1x1x128xf32> to vector<1x128xf32>
    %696 = vector.broadcast %693 : f32 to vector<1x128xf32>
    %697 = arith.mulf %695, %696 : vector<1x128xf32>
    %698 = arith.addf %688, %697 : vector<1x128xf32>
    %c0_i32_416 = arith.constant 0 : i32
    %699 = arith.addi %475, %c0_i32_416 : i32
    %c3_i32_417 = arith.constant 3 : i32
    %700 = arith.addi %699, %c3_i32_417 : i32
    %c1_i32_418 = arith.constant 1 : i32
    %701 = arith.addi %700, %c1_i32_418 : i32
    %702 = arith.index_cast %701 : i32 to index
    %703 = memref.load %arg1[%702] : memref<72xf32, #tpu.memory_space<smem>>
    %c0_419 = arith.constant 0 : index
    %c9_420 = arith.constant 9 : index
    %c0_421 = arith.constant 0 : index
    %c0_422 = arith.constant 0 : index
    %704 = vector.load %arg4[%c0_419, %c9_420, %c0_421, %c0_422] : memref<1x16x1x128xf32, #tpu.memory_space<vmem>>, vector<1x1x1x128xf32>
    %705 = vector.shape_cast %704 : vector<1x1x1x128xf32> to vector<1x128xf32>
    %706 = vector.broadcast %703 : f32 to vector<1x128xf32>
    %707 = arith.mulf %705, %706 : vector<1x128xf32>
    %708 = arith.addf %698, %707 : vector<1x128xf32>
    %c0_i32_423 = arith.constant 0 : i32
    %709 = arith.addi %475, %c0_i32_423 : i32
    %c3_i32_424 = arith.constant 3 : i32
    %710 = arith.addi %709, %c3_i32_424 : i32
    %c2_i32_425 = arith.constant 2 : i32
    %711 = arith.addi %710, %c2_i32_425 : i32
    %712 = arith.index_cast %711 : i32 to index
    %713 = memref.load %arg1[%712] : memref<72xf32, #tpu.memory_space<smem>>
    %c0_426 = arith.constant 0 : index
    %c10_427 = arith.constant 10 : index
    %c0_428 = arith.constant 0 : index
    %c0_429 = arith.constant 0 : index
    %714 = vector.load %arg4[%c0_426, %c10_427, %c0_428, %c0_429] : memref<1x16x1x128xf32, #tpu.memory_space<vmem>>, vector<1x1x1x128xf32>
    %715 = vector.shape_cast %714 : vector<1x1x1x128xf32> to vector<1x128xf32>
    %716 = vector.broadcast %713 : f32 to vector<1x128xf32>
    %717 = arith.mulf %715, %716 : vector<1x128xf32>
    %718 = arith.addf %708, %717 : vector<1x128xf32>
    %c0_i32_430 = arith.constant 0 : i32
    %719 = arith.addi %475, %c0_i32_430 : i32
    %c6_i32_431 = arith.constant 6 : i32
    %720 = arith.addi %719, %c6_i32_431 : i32
    %c0_i32_432 = arith.constant 0 : i32
    %721 = arith.addi %720, %c0_i32_432 : i32
    %722 = arith.index_cast %721 : i32 to index
    %723 = memref.load %arg1[%722] : memref<72xf32, #tpu.memory_space<smem>>
    %c0_433 = arith.constant 0 : index
    %c12_434 = arith.constant 12 : index
    %c0_435 = arith.constant 0 : index
    %c0_436 = arith.constant 0 : index
    %724 = vector.load %arg4[%c0_433, %c12_434, %c0_435, %c0_436] : memref<1x16x1x128xf32, #tpu.memory_space<vmem>>, vector<1x1x1x128xf32>
    %725 = vector.shape_cast %724 : vector<1x1x1x128xf32> to vector<1x128xf32>
    %726 = vector.broadcast %723 : f32 to vector<1x128xf32>
    %727 = arith.mulf %725, %726 : vector<1x128xf32>
    %728 = arith.addf %718, %727 : vector<1x128xf32>
    %c0_i32_437 = arith.constant 0 : i32
    %729 = arith.addi %475, %c0_i32_437 : i32
    %c6_i32_438 = arith.constant 6 : i32
    %730 = arith.addi %729, %c6_i32_438 : i32
    %c1_i32_439 = arith.constant 1 : i32
    %731 = arith.addi %730, %c1_i32_439 : i32
    %732 = arith.index_cast %731 : i32 to index
    %733 = memref.load %arg1[%732] : memref<72xf32, #tpu.memory_space<smem>>
    %c0_440 = arith.constant 0 : index
    %c13_441 = arith.constant 13 : index
    %c0_442 = arith.constant 0 : index
    %c0_443 = arith.constant 0 : index
    %734 = vector.load %arg4[%c0_440, %c13_441, %c0_442, %c0_443] : memref<1x16x1x128xf32, #tpu.memory_space<vmem>>, vector<1x1x1x128xf32>
    %735 = vector.shape_cast %734 : vector<1x1x1x128xf32> to vector<1x128xf32>
    %736 = vector.broadcast %733 : f32 to vector<1x128xf32>
    %737 = arith.mulf %735, %736 : vector<1x128xf32>
    %738 = arith.addf %728, %737 : vector<1x128xf32>
    %c0_i32_444 = arith.constant 0 : i32
    %739 = arith.addi %475, %c0_i32_444 : i32
    %c6_i32_445 = arith.constant 6 : i32
    %740 = arith.addi %739, %c6_i32_445 : i32
    %c2_i32_446 = arith.constant 2 : i32
    %741 = arith.addi %740, %c2_i32_446 : i32
    %742 = arith.index_cast %741 : i32 to index
    %743 = memref.load %arg1[%742] : memref<72xf32, #tpu.memory_space<smem>>
    %c0_447 = arith.constant 0 : index
    %c14_448 = arith.constant 14 : index
    %c0_449 = arith.constant 0 : index
    %c0_450 = arith.constant 0 : index
    %744 = vector.load %arg4[%c0_447, %c14_448, %c0_449, %c0_450] : memref<1x16x1x128xf32, #tpu.memory_space<vmem>>, vector<1x1x1x128xf32>
    %745 = vector.shape_cast %744 : vector<1x1x1x128xf32> to vector<1x128xf32>
    %746 = vector.broadcast %743 : f32 to vector<1x128xf32>
    %747 = arith.mulf %745, %746 : vector<1x128xf32>
    %748 = arith.addf %738, %747 : vector<1x128xf32>
    %cst_451 = arith.constant 0.000000e+00 : f32
    %749 = vector.broadcast %cst_451 : f32 to vector<1x128xf32>
    %c0_i32_452 = arith.constant 0 : i32
    %750 = arith.addi %475, %c0_i32_452 : i32
    %c0_i32_453 = arith.constant 0 : i32
    %751 = arith.addi %750, %c0_i32_453 : i32
    %c0_i32_454 = arith.constant 0 : i32
    %752 = arith.addi %751, %c0_i32_454 : i32
    %753 = arith.index_cast %752 : i32 to index
    %754 = memref.load %arg1[%753] : memref<72xf32, #tpu.memory_space<smem>>
    %c0_455 = arith.constant 0 : index
    %c5_456 = arith.constant 5 : index
    %c0_457 = arith.constant 0 : index
    %c0_458 = arith.constant 0 : index
    %755 = vector.load %arg4[%c0_455, %c5_456, %c0_457, %c0_458] : memref<1x16x1x128xf32, #tpu.memory_space<vmem>>, vector<1x1x1x128xf32>
    %756 = vector.shape_cast %755 : vector<1x1x1x128xf32> to vector<1x128xf32>
    %757 = vector.broadcast %754 : f32 to vector<1x128xf32>
    %758 = arith.mulf %756, %757 : vector<1x128xf32>
    %759 = arith.addf %749, %758 : vector<1x128xf32>
    %c0_i32_459 = arith.constant 0 : i32
    %760 = arith.addi %475, %c0_i32_459 : i32
    %c0_i32_460 = arith.constant 0 : i32
    %761 = arith.addi %760, %c0_i32_460 : i32
    %c1_i32_461 = arith.constant 1 : i32
    %762 = arith.addi %761, %c1_i32_461 : i32
    %763 = arith.index_cast %762 : i32 to index
    %764 = memref.load %arg1[%763] : memref<72xf32, #tpu.memory_space<smem>>
    %c0_462 = arith.constant 0 : index
    %c6_463 = arith.constant 6 : index
    %c0_464 = arith.constant 0 : index
    %c0_465 = arith.constant 0 : index
    %765 = vector.load %arg4[%c0_462, %c6_463, %c0_464, %c0_465] : memref<1x16x1x128xf32, #tpu.memory_space<vmem>>, vector<1x1x1x128xf32>
    %766 = vector.shape_cast %765 : vector<1x1x1x128xf32> to vector<1x128xf32>
    %767 = vector.broadcast %764 : f32 to vector<1x128xf32>
    %768 = arith.mulf %766, %767 : vector<1x128xf32>
    %769 = arith.addf %759, %768 : vector<1x128xf32>
    %c0_i32_466 = arith.constant 0 : i32
    %770 = arith.addi %475, %c0_i32_466 : i32
    %c0_i32_467 = arith.constant 0 : i32
    %771 = arith.addi %770, %c0_i32_467 : i32
    %c2_i32_468 = arith.constant 2 : i32
    %772 = arith.addi %771, %c2_i32_468 : i32
    %773 = arith.index_cast %772 : i32 to index
    %774 = memref.load %arg1[%773] : memref<72xf32, #tpu.memory_space<smem>>
    %c0_469 = arith.constant 0 : index
    %c7_470 = arith.constant 7 : index
    %c0_471 = arith.constant 0 : index
    %c0_472 = arith.constant 0 : index
    %775 = vector.load %arg4[%c0_469, %c7_470, %c0_471, %c0_472] : memref<1x16x1x128xf32, #tpu.memory_space<vmem>>, vector<1x1x1x128xf32>
    %776 = vector.shape_cast %775 : vector<1x1x1x128xf32> to vector<1x128xf32>
    %777 = vector.broadcast %774 : f32 to vector<1x128xf32>
    %778 = arith.mulf %776, %777 : vector<1x128xf32>
    %779 = arith.addf %769, %778 : vector<1x128xf32>
    %c0_i32_473 = arith.constant 0 : i32
    %780 = arith.addi %475, %c0_i32_473 : i32
    %c3_i32_474 = arith.constant 3 : i32
    %781 = arith.addi %780, %c3_i32_474 : i32
    %c0_i32_475 = arith.constant 0 : i32
    %782 = arith.addi %781, %c0_i32_475 : i32
    %783 = arith.index_cast %782 : i32 to index
    %784 = memref.load %arg1[%783] : memref<72xf32, #tpu.memory_space<smem>>
    %c0_476 = arith.constant 0 : index
    %c9_477 = arith.constant 9 : index
    %c0_478 = arith.constant 0 : index
    %c0_479 = arith.constant 0 : index
    %785 = vector.load %arg4[%c0_476, %c9_477, %c0_478, %c0_479] : memref<1x16x1x128xf32, #tpu.memory_space<vmem>>, vector<1x1x1x128xf32>
    %786 = vector.shape_cast %785 : vector<1x1x1x128xf32> to vector<1x128xf32>
    %787 = vector.broadcast %784 : f32 to vector<1x128xf32>
    %788 = arith.mulf %786, %787 : vector<1x128xf32>
    %789 = arith.addf %779, %788 : vector<1x128xf32>
    %c0_i32_480 = arith.constant 0 : i32
    %790 = arith.addi %475, %c0_i32_480 : i32
    %c3_i32_481 = arith.constant 3 : i32
    %791 = arith.addi %790, %c3_i32_481 : i32
    %c1_i32_482 = arith.constant 1 : i32
    %792 = arith.addi %791, %c1_i32_482 : i32
    %793 = arith.index_cast %792 : i32 to index
    %794 = memref.load %arg1[%793] : memref<72xf32, #tpu.memory_space<smem>>
    %c0_483 = arith.constant 0 : index
    %c10_484 = arith.constant 10 : index
    %c0_485 = arith.constant 0 : index
    %c0_486 = arith.constant 0 : index
    %795 = vector.load %arg4[%c0_483, %c10_484, %c0_485, %c0_486] : memref<1x16x1x128xf32, #tpu.memory_space<vmem>>, vector<1x1x1x128xf32>
    %796 = vector.shape_cast %795 : vector<1x1x1x128xf32> to vector<1x128xf32>
    %797 = vector.broadcast %794 : f32 to vector<1x128xf32>
    %798 = arith.mulf %796, %797 : vector<1x128xf32>
    %799 = arith.addf %789, %798 : vector<1x128xf32>
    %c0_i32_487 = arith.constant 0 : i32
    %800 = arith.addi %475, %c0_i32_487 : i32
    %c3_i32_488 = arith.constant 3 : i32
    %801 = arith.addi %800, %c3_i32_488 : i32
    %c2_i32_489 = arith.constant 2 : i32
    %802 = arith.addi %801, %c2_i32_489 : i32
    %803 = arith.index_cast %802 : i32 to index
    %804 = memref.load %arg1[%803] : memref<72xf32, #tpu.memory_space<smem>>
    %c0_490 = arith.constant 0 : index
    %c11_491 = arith.constant 11 : index
    %c0_492 = arith.constant 0 : index
    %c0_493 = arith.constant 0 : index
    %805 = vector.load %arg4[%c0_490, %c11_491, %c0_492, %c0_493] : memref<1x16x1x128xf32, #tpu.memory_space<vmem>>, vector<1x1x1x128xf32>
    %806 = vector.shape_cast %805 : vector<1x1x1x128xf32> to vector<1x128xf32>
    %807 = vector.broadcast %804 : f32 to vector<1x128xf32>
    %808 = arith.mulf %806, %807 : vector<1x128xf32>
    %809 = arith.addf %799, %808 : vector<1x128xf32>
    %c0_i32_494 = arith.constant 0 : i32
    %810 = arith.addi %475, %c0_i32_494 : i32
    %c6_i32_495 = arith.constant 6 : i32
    %811 = arith.addi %810, %c6_i32_495 : i32
    %c0_i32_496 = arith.constant 0 : i32
    %812 = arith.addi %811, %c0_i32_496 : i32
    %813 = arith.index_cast %812 : i32 to index
    %814 = memref.load %arg1[%813] : memref<72xf32, #tpu.memory_space<smem>>
    %c0_497 = arith.constant 0 : index
    %c13_498 = arith.constant 13 : index
    %c0_499 = arith.constant 0 : index
    %c0_500 = arith.constant 0 : index
    %815 = vector.load %arg4[%c0_497, %c13_498, %c0_499, %c0_500] : memref<1x16x1x128xf32, #tpu.memory_space<vmem>>, vector<1x1x1x128xf32>
    %816 = vector.shape_cast %815 : vector<1x1x1x128xf32> to vector<1x128xf32>
    %817 = vector.broadcast %814 : f32 to vector<1x128xf32>
    %818 = arith.mulf %816, %817 : vector<1x128xf32>
    %819 = arith.addf %809, %818 : vector<1x128xf32>
    %c0_i32_501 = arith.constant 0 : i32
    %820 = arith.addi %475, %c0_i32_501 : i32
    %c6_i32_502 = arith.constant 6 : i32
    %821 = arith.addi %820, %c6_i32_502 : i32
    %c1_i32_503 = arith.constant 1 : i32
    %822 = arith.addi %821, %c1_i32_503 : i32
    %823 = arith.index_cast %822 : i32 to index
    %824 = memref.load %arg1[%823] : memref<72xf32, #tpu.memory_space<smem>>
    %c0_504 = arith.constant 0 : index
    %c14_505 = arith.constant 14 : index
    %c0_506 = arith.constant 0 : index
    %c0_507 = arith.constant 0 : index
    %825 = vector.load %arg4[%c0_504, %c14_505, %c0_506, %c0_507] : memref<1x16x1x128xf32, #tpu.memory_space<vmem>>, vector<1x1x1x128xf32>
    %826 = vector.shape_cast %825 : vector<1x1x1x128xf32> to vector<1x128xf32>
    %827 = vector.broadcast %824 : f32 to vector<1x128xf32>
    %828 = arith.mulf %826, %827 : vector<1x128xf32>
    %829 = arith.addf %819, %828 : vector<1x128xf32>
    %c0_i32_508 = arith.constant 0 : i32
    %830 = arith.addi %475, %c0_i32_508 : i32
    %c6_i32_509 = arith.constant 6 : i32
    %831 = arith.addi %830, %c6_i32_509 : i32
    %c2_i32_510 = arith.constant 2 : i32
    %832 = arith.addi %831, %c2_i32_510 : i32
    %833 = arith.index_cast %832 : i32 to index
    %834 = memref.load %arg1[%833] : memref<72xf32, #tpu.memory_space<smem>>
    %c0_511 = arith.constant 0 : index
    %c15_512 = arith.constant 15 : index
    %c0_513 = arith.constant 0 : index
    %c0_514 = arith.constant 0 : index
    %835 = vector.load %arg4[%c0_511, %c15_512, %c0_513, %c0_514] : memref<1x16x1x128xf32, #tpu.memory_space<vmem>>, vector<1x1x1x128xf32>
    %836 = vector.shape_cast %835 : vector<1x1x1x128xf32> to vector<1x128xf32>
    %837 = vector.broadcast %834 : f32 to vector<1x128xf32>
    %838 = arith.mulf %836, %837 : vector<1x128xf32>
    %839 = arith.addf %829, %838 : vector<1x128xf32>
    %840 = vector.shape_cast %566 : vector<1x128xf32> to vector<1x1x128xf32>
    %cst_515 = arith.constant dense<0.000000e+00> : vector<1xf32>
    %841 = vector.multi_reduction <add>, %840, %cst_515 [1, 2] : vector<1x1x128xf32> to vector<1xf32>
    %842 = vector.shape_cast %841 : vector<1xf32> to vector<1x1x1xf32>
    %843 = vector.extract %842[0, 0, 0] : f32 from vector<1x1x1xf32>
    %844 = vector.broadcast %843 : f32 to vector<1x1xf32>
    %845 = vector.shape_cast %657 : vector<1x128xf32> to vector<1x1x128xf32>
    %cst_516 = arith.constant dense<0.000000e+00> : vector<1xf32>
    %846 = vector.multi_reduction <add>, %845, %cst_516 [1, 2] : vector<1x1x128xf32> to vector<1xf32>
    %847 = vector.shape_cast %846 : vector<1xf32> to vector<1x1x1xf32>
    %848 = vector.extract %847[0, 0, 0] : f32 from vector<1x1x1xf32>
    %849 = vector.broadcast %848 : f32 to vector<1x1xf32>
    %850 = arith.addf %844, %849 : vector<1x1xf32>
    %851 = vector.shape_cast %748 : vector<1x128xf32> to vector<1x1x128xf32>
    %cst_517 = arith.constant dense<0.000000e+00> : vector<1xf32>
    %852 = vector.multi_reduction <add>, %851, %cst_517 [1, 2] : vector<1x1x128xf32> to vector<1xf32>
    %853 = vector.shape_cast %852 : vector<1xf32> to vector<1x1x1xf32>
    %854 = vector.extract %853[0, 0, 0] : f32 from vector<1x1x1xf32>
    %855 = vector.broadcast %854 : f32 to vector<1x1xf32>
    %856 = arith.addf %850, %855 : vector<1x1xf32>
    %857 = vector.shape_cast %839 : vector<1x128xf32> to vector<1x1x128xf32>
    %cst_518 = arith.constant dense<0.000000e+00> : vector<1xf32>
    %858 = vector.multi_reduction <add>, %857, %cst_518 [1, 2] : vector<1x1x128xf32> to vector<1xf32>
    %859 = vector.shape_cast %858 : vector<1xf32> to vector<1x1x1xf32>
    %860 = vector.extract %859[0, 0, 0] : f32 from vector<1x1x1xf32>
    %861 = vector.broadcast %860 : f32 to vector<1x1xf32>
    %862 = arith.addf %856, %861 : vector<1x1xf32>
    %cst_519 = arith.constant 0.001953125 : f32
    %863 = vector.broadcast %cst_519 : f32 to vector<1x1xf32>
    %864 = arith.mulf %862, %863 : vector<1x1xf32>
    %cst_520 = arith.constant 0.000000e+00 : f32
    %865 = vector.broadcast %cst_520 : f32 to vector<1x1xf32>
    %866 = vector.broadcast %864 : vector<1x1xf32> to vector<1x128xf32>
    %867 = arith.subf %566, %866 : vector<1x128xf32>
    %868 = arith.mulf %867, %867 : vector<1x128xf32>
    %869 = vector.shape_cast %868 : vector<1x128xf32> to vector<1x1x128xf32>
    %cst_521 = arith.constant dense<0.000000e+00> : vector<1xf32>
    %870 = vector.multi_reduction <add>, %869, %cst_521 [1, 2] : vector<1x1x128xf32> to vector<1xf32>
    %871 = vector.shape_cast %870 : vector<1xf32> to vector<1x1x1xf32>
    %872 = vector.extract %871[0, 0, 0] : f32 from vector<1x1x1xf32>
    %873 = vector.broadcast %872 : f32 to vector<1x1xf32>
    %874 = arith.addf %865, %873 : vector<1x1xf32>
    %875 = vector.broadcast %864 : vector<1x1xf32> to vector<1x128xf32>
    %876 = arith.subf %657, %875 : vector<1x128xf32>
    %877 = arith.mulf %876, %876 : vector<1x128xf32>
    %878 = vector.shape_cast %877 : vector<1x128xf32> to vector<1x1x128xf32>
    %cst_522 = arith.constant dense<0.000000e+00> : vector<1xf32>
    %879 = vector.multi_reduction <add>, %878, %cst_522 [1, 2] : vector<1x1x128xf32> to vector<1xf32>
    %880 = vector.shape_cast %879 : vector<1xf32> to vector<1x1x1xf32>
    %881 = vector.extract %880[0, 0, 0] : f32 from vector<1x1x1xf32>
    %882 = vector.broadcast %881 : f32 to vector<1x1xf32>
    %883 = arith.addf %874, %882 : vector<1x1xf32>
    %884 = vector.broadcast %864 : vector<1x1xf32> to vector<1x128xf32>
    %885 = arith.subf %748, %884 : vector<1x128xf32>
    %886 = arith.mulf %885, %885 : vector<1x128xf32>
    %887 = vector.shape_cast %886 : vector<1x128xf32> to vector<1x1x128xf32>
    %cst_523 = arith.constant dense<0.000000e+00> : vector<1xf32>
    %888 = vector.multi_reduction <add>, %887, %cst_523 [1, 2] : vector<1x1x128xf32> to vector<1xf32>
    %889 = vector.shape_cast %888 : vector<1xf32> to vector<1x1x1xf32>
    %890 = vector.extract %889[0, 0, 0] : f32 from vector<1x1x1xf32>
    %891 = vector.broadcast %890 : f32 to vector<1x1xf32>
    %892 = arith.addf %883, %891 : vector<1x1xf32>
    %893 = vector.broadcast %864 : vector<1x1xf32> to vector<1x128xf32>
    %894 = arith.subf %839, %893 : vector<1x128xf32>
    %895 = arith.mulf %894, %894 : vector<1x128xf32>
    %896 = vector.shape_cast %895 : vector<1x128xf32> to vector<1x1x128xf32>
    %cst_524 = arith.constant dense<0.000000e+00> : vector<1xf32>
    %897 = vector.multi_reduction <add>, %896, %cst_524 [1, 2] : vector<1x1x128xf32> to vector<1xf32>
    %898 = vector.shape_cast %897 : vector<1xf32> to vector<1x1x1xf32>
    %899 = vector.extract %898[0, 0, 0] : f32 from vector<1x1x1xf32>
    %900 = vector.broadcast %899 : f32 to vector<1x1xf32>
    %901 = arith.addf %892, %900 : vector<1x1xf32>
    %cst_525 = arith.constant 0.001953125 : f32
    %902 = vector.broadcast %cst_525 : f32 to vector<1x1xf32>
    %903 = arith.mulf %901, %902 : vector<1x1xf32>
    %904 = arith.index_cast %474 : i32 to index
    %905 = memref.load %arg2[%904] : memref<8xf32, #tpu.memory_space<smem>>
    %cst_526 = arith.constant 9.99999974E-6 : f32
    %906 = vector.broadcast %cst_526 : f32 to vector<1x1xf32>
    %907 = arith.addf %903, %906 : vector<1x1xf32>
    %908 = math.rsqrt %907 : vector<1x1xf32>
    %909 = vector.broadcast %905 : f32 to vector<1x1xf32>
    %910 = arith.mulf %909, %908 : vector<1x1xf32>
    %911 = arith.index_cast %474 : i32 to index
    %912 = memref.load %arg3[%911] : memref<8xf32, #tpu.memory_space<smem>>
    %913 = arith.mulf %864, %910 : vector<1x1xf32>
    %914 = vector.broadcast %912 : f32 to vector<1x1xf32>
    %915 = arith.subf %914, %913 : vector<1x1xf32>
    %916 = vector.broadcast %910 : vector<1x1xf32> to vector<1x128xf32>
    %917 = arith.mulf %566, %916 : vector<1x128xf32>
    %918 = vector.broadcast %915 : vector<1x1xf32> to vector<1x128xf32>
    %919 = arith.addf %917, %918 : vector<1x128xf32>
    %cst_527 = arith.constant 0.000000e+00 : f32
    %920 = vector.broadcast %cst_527 : f32 to vector<1x128xf32>
    %921 = arith.maximumf %919, %920 : vector<1x128xf32>
    %922 = vector.broadcast %910 : vector<1x1xf32> to vector<1x128xf32>
    %923 = arith.mulf %657, %922 : vector<1x128xf32>
    %924 = vector.broadcast %915 : vector<1x1xf32> to vector<1x128xf32>
    %925 = arith.addf %923, %924 : vector<1x128xf32>
    %cst_528 = arith.constant 0.000000e+00 : f32
    %926 = vector.broadcast %cst_528 : f32 to vector<1x128xf32>
    %927 = arith.maximumf %925, %926 : vector<1x128xf32>
    %928 = arith.maximumf %921, %927 : vector<1x128xf32>
    %929 = vector.broadcast %910 : vector<1x1xf32> to vector<1x128xf32>
    %930 = arith.mulf %748, %929 : vector<1x128xf32>
    %931 = vector.broadcast %915 : vector<1x1xf32> to vector<1x128xf32>
    %932 = arith.addf %930, %931 : vector<1x128xf32>
    %cst_529 = arith.constant 0.000000e+00 : f32
    %933 = vector.broadcast %cst_529 : f32 to vector<1x128xf32>
    %934 = arith.maximumf %932, %933 : vector<1x128xf32>
    %935 = arith.maximumf %928, %934 : vector<1x128xf32>
    %936 = vector.broadcast %910 : vector<1x1xf32> to vector<1x128xf32>
    %937 = arith.mulf %839, %936 : vector<1x128xf32>
    %938 = vector.broadcast %915 : vector<1x1xf32> to vector<1x128xf32>
    %939 = arith.addf %937, %938 : vector<1x128xf32>
    %cst_530 = arith.constant 0.000000e+00 : f32
    %940 = vector.broadcast %cst_530 : f32 to vector<1x128xf32>
    %941 = arith.maximumf %939, %940 : vector<1x128xf32>
    %942 = arith.maximumf %935, %941 : vector<1x128xf32>
    %c0_531 = arith.constant 0 : index
    %c1_532 = arith.constant 1 : index
    %c0_533 = arith.constant 0 : index
    %c0_534 = arith.constant 0 : index
    %943 = vector.load %arg5[%c0_531, %c1_532, %c0_533, %c0_534] : memref<1x2x1x128xf32, #tpu.memory_space<vmem>>, vector<1x1x1x128xf32>
    %944 = vector.shape_cast %943 : vector<1x1x1x128xf32> to vector<1x128xf32>
    %945 = vector.shape_cast %942 : vector<1x128xf32> to vector<1x1x1x128xf32>
    tpu.vector_store %arg5[%c0_531, %c1_532, %c0_533, %c0_534], %945 {strides = array<i32>} : memref<1x2x1x128xf32, #tpu.memory_space<vmem>>, vector<1x1x1x128xf32>,
    return
  }
  func.func @transform_0(%arg0: i32, %arg1: memref<72xf32, #tpu.memory_space<smem>>, %arg2: memref<8xf32, #tpu.memory_space<smem>>, %arg3: memref<8xf32, #tpu.memory_space<smem>>) -> (i32, i32, i32, i32) {
    %c0_i32 = arith.constant 0 : i32
    %c0_i32_0 = arith.constant 0 : i32
    %c0_i32_1 = arith.constant 0 : i32
    %c0_i32_2 = arith.constant 0 : i32
    return %arg0, %c0_i32, %c0_i32_0, %c0_i32_1 : i32, i32, i32, i32
  }
  func.func @transform_1(%arg0: i32, %arg1: memref<72xf32, #tpu.memory_space<smem>>, %arg2: memref<8xf32, #tpu.memory_space<smem>>, %arg3: memref<8xf32, #tpu.memory_space<smem>>) -> (i32, i32, i32, i32) {
    %c0_i32 = arith.constant 0 : i32
    %c0_i32_0 = arith.constant 0 : i32
    %c0_i32_1 = arith.constant 0 : i32
    %c0_i32_2 = arith.constant 0 : i32
    return %arg0, %c0_i32, %c0_i32_0, %c0_i32_1 : i32, i32, i32, i32
  }
}

</mosaic_0001>

<bundles_post_ra>
// kernel: tpu_custom_call.1
= control target key start
LH: loop header
LB: loop body
LE: loop exit
PB: predicated region body
PF: predicated region fallthrough
CT: control target
= control target key end

     0   :  { %s1410_s0 = inlined_call_operand.hbm [shape: f32[72], index: 0, kind: input, shape index: {}]   ;;  %s1411_s3 = inlined_call_operand.hbm [shape: f32[4,16,1,128], index: 3, kind: input, shape index: {}]   ;;  %s1412_s4 = inlined_call_operand.hbm [shape: f32[4,2,1,128], index: 4, kind: output, shape index: {}]   ;;  %s1413_s1 = inlined_call_operand.vmem [shape: f32[8], index: 1, kind: input, shape index: {}]   ;;  %s1414_s2 = inlined_call_operand.vmem [shape: f32[8], index: 2, kind: input, shape index: {}]  }
   0x1   :  { %s883_s17 = scalar_lea.hbm %s1410_s0, 16 }
   0x2   :  { %p884_p0 = scmp.ne.s32.totalorder %s1410_s0, %s883_s17  ;;  %p887_p1 = scmp.lt.u32.totalorder %s883_s17, %s1410_s0 }
   0x4   :  { %p889_p2 = pnand %p887_p1, %p884_p0 }
   0x6   :  { %892 = shalt.err (!%p889_p2)  }
   0x7   :  { %s1017_s22 = smov [#allocation3]   ;;  %s11_s27 = sshll.u32 %s1413_s1, 4  ;;  %s12_s27 = int_to_ptr.vmem [resolvable:$true] %s11_s27 }
   0x8   :  { %10 = dma.hbm_to_smem %s1410_s0, 16, %s1017_s22, [#allocation2] }
   0x9   :  { %s15_s30 = sshll.u32 %s1414_s2, 4  ;;  %s893_s5 = scalar_lea.vmem %s12_s27, 16  ;;  %s16_s30 = int_to_ptr.vmem [resolvable:$true] %s15_s30 }
   0xa   :  { %p894_p3 = scmp.ne.s32.totalorder %s12_s27, %s893_s5  ;;  %p898_p4 = scmp.lt.s32.totalorder %s12_s27, %s12_s27 }
   0xb   :  { %p899_p5 = scmp.lt.s32.totalorder %s893_s5, %s893_s5 }
   0xd   :  { %p900_p6 = por %p899_p5, %p898_p4 }
   0xf   :  { %p901_p7 = pnand %p900_p6, %p894_p3 }
  0x11   :  { %904 = shalt.err (!%p901_p7)  }
  0x12   :  { %s1018_s6 = smov [#allocation4]   ;;  %s905_s0 = scalar_lea.vmem %s16_s30, 16 }
  0x13   :  { %14 = dma.vmem_to_smem %s12_s27, 16, %s1018_s6, [#allocation2] }
  0x14   :  { %p906_p8 = scmp.ne.s32.totalorder %s16_s30, %s905_s0  ;;  %p910_p9 = scmp.lt.s32.totalorder %s16_s30, %s16_s30 }
  0x15   :  { %p911_p10 = scmp.lt.s32.totalorder %s905_s0, %s905_s0 }
  0x17   :  { %p912_p11 = por %p911_p10, %p910_p9 }
  0x19   :  { %p913_p12 = pnand %p912_p11, %p906_p8 }
  0x1b   :  { %916 = shalt.err (!%p913_p12)  }
  0x1c   :  { %s1019_s1 = smov [#allocation5]  }
  0x1d   :  { %18 = dma.vmem_to_smem %s16_s30, 16, %s1019_s1, [#allocation2] }
  0x1e   :  { %991 = dma.done.wait [#allocation2], 48 }
  0x1f   :  { %992 = vsyncadd [#allocation2], 4294967248 }
  0x20   :  { %20 = sfence }
  0x21   :  { %21 = vsyncpa [#allocation7], 0 }
  0x22   :  { %23 = vsyncpa [#allocation7 + $0x1], 0 }
  0x23   :  { %24 = vsyncpa [#allocation8], 0 }
  0x24   :  { %26 = vsyncpa [#allocation8 + $0x1], 0  ;;  %s1069_s2 = smov 0   ;;  %s1071_s7 = smov 0  }
  0x25   :  { %s1073_s8 = smov 0   ;;  %s1075_s9 = smov 0  }
  0x26 LB: > { %s1090_s10 = sadd.s32 4294967295, %s1015_s9   ;;  %s746_s11 = sadd.s32 4294967294, %s1015_s9   ;;  %s1015_s9 = sphi %s1075_s9, %s1426_s9   ;;  %s1011_s8 = sphi %s1073_s8, %s1425_s8   ;;  %s1007_s7 = sphi %s1071_s7, %s1424_s7   ;;  %s1003_s2 = sphi %s1069_s2, %s1423_s2  }
  0x27   : > { %s1094_s12 = sadd.s32 1, %s1015_s9   ;;  %s39_s13 = sadd.s32 1, %s1011_s8 }
  0x28   : > { %s36_s14 = ssub.s32 %s1015_s9, %s1094_s12  ;;  %p46_p13 = scmp.ne.s32.totalorder %s1011_s8, %s1007_s7 }
  0x29   : > { %p37_p0 = scmp.eq.s32.totalorder %s36_s14, 0  ;;  %p47_p1 = scmp.eq.s32.totalorder %s1015_s9, 0 }
  0x2a   : > { %p52_p2 = scmp.ne.s32.totalorder %s1007_s7, %s1003_s2  ;;  %p53_p3 = scmp.eq.s32.totalorder %s1090_s10, 0 }
  0x2b   : > { %s1106_s15 = scalar_select %p37_p0, %s1011_s8, %s39_s13  }
  0x2c   : > { %p1108_p4 = por %p47_p1, %p46_p13  ;;  %p1112_p5 = por %p53_p3, %p52_p2 }
  0x2d   : > { %p76_p6 = scmp.eq.s32.totalorder %s1090_s10, 3  ;;  %p82_p7 = scmp.eq.s32.totalorder %s746_s11, 3 }
  0x2e   : > { %p838_p8 = scmp.lt.s32.totalorder %s1015_s9, 4  ;;  %s102_s20 = sand.u32 1, %s1011_s8  }
  0x2f   : > { %p1118_p9 = por %p76_p6, %p46_p13  ;;  %p1122_p10 = por %p82_p7, %p52_p2 }
  0x30   : > { %s792_s21 = sshll.u32 %s1015_s9, 8  ;;  %s749_s22 = sshll.u32 %s102_s20, 4 }
  0x31   : > { %s1418_s18 = scalar_select %p1118_p9, 1, 0 }
  0x32   : > { %s1419_s19 = scalar_select %p1122_p10, 1, 0 }
  0x33   : > { %s1131_s25 = scalar_lea.hbm %s1411_s3, %s792_s21  ;;  %s106_s26 = scalar_lea.vmem [#allocation6], %s749_s22 }
  0x34   : > { %s113_s27 = sshll.u32 %s106_s26, 4  ;;  %p1135_p11 = pnand %p838_p8, %p1108_p4  ;;  %s1139_s27 = int_to_ptr.vmem [resolvable:$true] %s113_s27 }
  0x35   : > { %s1141_s29 = scalar_lea.sflag [#allocation7], %s102_s20  ;;  %s917_s30 = scalar_lea.hbm %s1131_s25, 256 }
  0x36   : > { %p918_p12 = scmp.ne.s32.totalorder %s1131_s25, %s917_s30  ;;  %p919_p13 = pneg %p1135_p11 }
  0x37   : > { %s922_s0 = scalar_lea.hbm %s1411_s3, 1024  ;;  %p923_p2 = scmp.lt.u32.totalorder %s1131_s25, %s1411_s3 }
  0x38   : > { %p920_p0 = pnand %p919_p13, %p918_p12  ;;  %p924_p3 = scmp.lt.u32.totalorder %s922_s0, %s917_s30 }
  0x39   : > { %p926_p6 = scmp.lt.u32.totalorder %s917_s30, %s1131_s25 }
  0x3a   : > { %p921_p1 = pneg %p920_p0  ;;  %p925_p4 = por %p924_p3, %p923_p2 }
  0x3c   : > { %p927_p7 = por %p926_p6, %p925_p4 }
  0x3e   : > { %p928_p8 = pnand %p927_p7, %p921_p1 }
  0x40   : > { %931 = shalt.err (!%p928_p8)
}
  0x41   : > { %s932_s13 = scalar_lea.vmem %s1139_s27, 256  ;;  %s1020_s14 = smov [#allocation6]  }
  0x42   : > { %p933_p12 = scmp.ne.s32.totalorder %s1139_s27, %s932_s13  ;;  %s937_s16 = sshll.u32 %s1020_s14, 4  ;;  %s938_s16 = int_to_ptr.vmem [resolvable:$false] %s937_s16 }
  0x43   : > { %s939_s20 = scalar_lea.vmem %s938_s16, 512  ;;  %p940_p9 = scmp.lt.s32.totalorder %s1139_s27, %s938_s16 }
  0x44   : > { %p935_p0 = pnand %p933_p12, %p919_p13  ;;  %p941_p2 = scmp.lt.s32.totalorder %s939_s20, %s932_s13 }
  0x46   : > { %p936_p10 = pneg %p935_p0  ;;  %p942_p3 = por %p941_p2, %p940_p9 }
  0x48   : > { %p943_p4 = pnand %p942_p3, %p936_p10 }
  0x4a   : > { %946 = shalt.err (!%p943_p4)
}
  0x4b   : > { %s1021_s21 = smov 16   ;;  %s1022_s22 = smov 1  }
  0x4c   : > { %833 = dma.hbm_to_vmem [thread:$0]  (!%p1135_p11), %s1131_s25, 256, %s1139_s27, %s1141_s29, %s1021_s21, %s1021_s21, %s1022_s22  }
  0x4d   : > { %p752_p13 = scmp.ge.s32.totalorder %s1015_s9, 1  ;;  %p121_p1 = scmp.lt.s32.totalorder %s1015_s9, 5 }
  0x4f   : > { %p122_p6 = pnand %p752_p13, %p121_p1 }
  0x50   : > { %s1172_s23 = sand.u32 (!%p122_p6), 1, %s1007_s7  }
  0x51   : > { %125 = sbr.rel (%p122_p6) target bundleno = 828 (0x33c), region = 24  ;;  %s753_s24 = sshll.u32 (!%p122_p6), %s1172_s23, 4 }
  0x52   : > { %s128_s26 = scalar_lea.sflag (!%p122_p6), [#allocation7], %s1172_s23  ;;  %s1176_s30 = scalar_lea.vmem (!%p122_p6), [#allocation6], %s753_s24 }
  0x58   : > { %994 = dma.done.wait (%p1112_p5), %s128_s26, 256  }
  0x59   : > { %996 = vsyncadd (%p1112_p5), %s128_s26, 4294967040  ;;  %s151_s25 = smul.u32 18, %s1090_s10  ;;  %v758_v0 = vld [vmem:[%s1176_s30 + $0x4] sm:$0x1]  ;;  %v1185_v1 = vld [vmem:[%s1176_s30 + $0x5] sm:$0x1] }
  0x5a   : > { %v1188_v3 = vld [vmem:[%s1176_s30 + $0x6] sm:$0x1]  ;;  %v761_v5 = vld [vmem:[%s1176_s30 + $0x8] sm:$0x1]  ;;  %v1193_v10 = vld [vmem:[%s1176_s30 + $0x9] sm:$0x1] }
  0x5b   : > { %s152_s27 = sld [smem:[#allocation3 + %s151_s25]]  ;;  %s157_s28 = sadd.s32 1, %s151_s25  ;;  %v153_v12 = vld [vmem:[%s1176_s30] sm:$0x1]  ;;  %v756_v13 = vld [vmem:[%s1176_s30 + $0x1] sm:$0x1] }
  0x5c   : > { %s158_s29 = sld [smem:[#allocation3 + %s157_s28]]  ;;  %s164_s5 = sadd.s32 2, %s151_s25  ;;  %v757_v18 = vld [vmem:[%s1176_s30 + $0x2] sm:$0x1]  ;;  %v1200_v20 = vld [vmem:[%s1176_s30 + $0xa] sm:$0x1] }
  0x5d   : > { %s165_s6 = sld [smem:[#allocation3 + %s164_s5]]  ;;  %s171_s0 = sadd.s32 3, %s151_s25  ;;  %v767_v29 = vld [vmem:[%s1176_s30 + $0xc] sm:$0x1]  ;;  %v768_v30 = vld [vmem:[%s1176_s30 + $0xd] sm:$0x1] }
  0x5e   : > { %s172_s1 = sld [smem:[#allocation3 + %s171_s0]]  ;;  %s178_s11 = sadd.s32 4, %s151_s25  ;;  %v765_v35 = vld [vmem:[%s1176_s30 + $0x7] sm:$0x1]  ;;  %v769_v37 = vld [vmem:[%s1176_s30 + $0xe] sm:$0x1] }
  0x5f   : > { %s179_s13 = sld [smem:[#allocation3 + %s178_s11]]  ;;  %s185_s14 = sadd.s32 5, %s151_s25  ;;  %v766_v46 = vld [vmem:[%s1176_s30 + $0xb] sm:$0x1]  ;;  %v764_v49 = vld [vmem:[%s1176_s30 + $0x3] sm:$0x1] }
  0x60   : > { %s186_s17 = sld [smem:[#allocation3 + %s185_s14]]  ;;  %s192_s16 = sadd.s32 6, %s151_s25  ;;  %vm281_vm0 = vcmask 1040384  }
  0x61   : > { %v154_v2 = vstv %s152_s27  ;;  %s193_s20 = sld [smem:[#allocation3 + %s192_s16]]  ;;  %s199_s21 = sadd.s32 7, %s151_s25 }
  0x62   : > { %v161_v4 = vstv %s158_s29  ;;  %s200_s22 = sld [smem:[#allocation3 + %s199_s21]]  ;;  %s206_s24 = sadd.s32 8, %s151_s25  ;;  %v237_v6 = vmul.f32 %v758_v0, %v154_v2  ;;  %v155_v17 = vmul.f32 %v154_v2, %v153_v12  ;;  %v261_v25 = vmul.f32 %v1185_v1, %v154_v2 }
  0x63   : > { %v168_v7 = vstv %s165_s6  ;;  %s207_s26 = sld [smem:[#allocation3 + %s206_s24]]  ;;  %v239_v8 = vmul.f32 %v1185_v1, %v161_v4  ;;  %v162_v21 = vmul.f32 %v756_v13, %v161_v4  ;;  %v263_v26 = vmul.f32 %v1188_v3, %v161_v4  ;;  %s1246_s25 = sshll.u32 %s1090_s10, 1 }
  0x64   : > { %v175_v9 = vstv %s172_s1  ;;  %v241_v11 = vmul.f32 %v1188_v3, %v168_v7  ;;  %v169_v22 = vmul.f32 %v757_v18, %v168_v7  ;;  %v215_v45 = vmul.f32 %v757_v18, %v161_v4  ;;  %s1249_s27 = sadd.s32 1, %s1246_s25  ;;  %p1421_p9 = scmp.ne.s32.totalorder %s1418_s18, 0 }
  0x65   : > { %v182_v14 = vstv %s179_s13  ;;  %v240_v15 = vadd.f32 %v239_v8, %v237_v6  ;;  %v243_v16 = vmul.f32 %v761_v5, %v175_v9  ;;  %v163_v31 = vadd.f32 %v162_v21, %v155_v17  ;;  %s1252_s28 = smul.u32 9, %s1249_s27 }
  0x66   : > { %v189_v19 = vstv %s186_s17  ;;  %v245_v24 = vmul.f32 %v1193_v10, %v182_v14  ;;  %v176_v32 = vmul.f32 %v758_v0, %v175_v9  ;;  %v183_v39 = vmul.f32 %v1185_v1, %v182_v14 }
  0x67   : > { %v242_v23 = vadd.f32 %v241_v11, %v240_v15  ;;  %v196_v27 = vstv %s193_s20  ;;  %v247_v34 = vmul.f32 %v1200_v20, %v189_v19  ;;  %v170_v38 = vadd.f32 %v169_v22, %v163_v31  ;;  %v770_v15 = vld [vmem:[%s1176_s30 + $0xf] sm:$0x1]  ;;  %s419_s29 = sadd.s32 1, %s1252_s28  ;;  %s414_s5 = sld [smem:[#allocation3 + %s1252_s28]] }
  0x68   : > { %v1205_v28 = vstv %s200_s22  ;;  %v251_v41 = vmul.f32 %v767_v29, %v196_v27  ;;  %v190_v43 = vmul.f32 %v1188_v3, %v189_v19  ;;  %v264_v47 = vadd.f32 %v263_v26, %v261_v25  ;;  %s420_s6 = sld [smem:[#allocation3 + %s419_s29]]  ;;  %s425_s0 = sadd.s32 2, %s1252_s28 }
  0x69   : > { %v244_v33 = vadd.f32 %v243_v16, %v242_v23  ;;  %v210_v36 = vstv %s207_s26  ;;  %v255_v42 = vmul.f32 %v768_v30, %v1205_v28  ;;  %v177_v44 = vadd.f32 %v176_v32, %v170_v38  ;;  %s426_s1 = sld [smem:[#allocation3 + %s425_s0]]  ;;  %s431_s11 = sadd.s32 3, %s1252_s28 }
  0x6a   : > { %v265_v48 = vmul.f32 %v765_v35, %v168_v7  ;;  %v259_v51 = vmul.f32 %v769_v37, %v210_v36  ;;  %v197_v52 = vmul.f32 %v761_v5, %v196_v27  ;;  %v267_v53 = vmul.f32 %v1193_v10, %v175_v9  ;;  %s432_s13 = sld [smem:[#allocation3 + %s431_s11]]  ;;  %s437_s14 = sadd.s32 4, %s1252_s28 }
  0x6b   : > { %v246_v40 = vadd.f32 %v245_v24, %v244_v33  ;;  %v184_v54 = vadd.f32 %v183_v39, %v177_v44  ;;  %v269_v56 = vmul.f32 %v1200_v20, %v182_v14  ;;  %v213_v57 = vmul.f32 %v756_v13, %v154_v2  ;;  %s438_s17 = sld [smem:[#allocation3 + %s437_s14]]  ;;  %s443_s16 = sadd.s32 5, %s1252_s28  ;;  %v772_v39 = vld [vmem:[%s1176_s30 + $0x2] sm:$0x1] }
  0x6c   : > { %v266_v55 = vadd.f32 %v265_v48, %v264_v47  ;;  %v204_v59 = vmul.f32 %v1193_v10, %v1205_v28  ;;  %v271_v60 = vmul.f32 %v766_v46, %v189_v19  ;;  %v219_v61 = vmul.f32 %v764_v49, %v168_v7  ;;  %s444_s20 = sld [smem:[#allocation3 + %s443_s16]]  ;;  %s449_s21 = sadd.s32 6, %s1252_s28  ;;  %v779_v47 = vld [vmem:[%s1176_s30 + $0x3] sm:$0x1] }
  0x6d   : > { %v248_v50 = vadd.f32 %v247_v34, %v246_v40  ;;  %v191_v62 = vadd.f32 %v190_v43, %v184_v54  ;;  %v216_v0 = vadd.f32 %v215_v45, %v213_v57  ;;  %v221_v4 = vmul.f32 %v1185_v1, %v175_v9  ;;  %v773_v45 = vld [vmem:[%s1176_s30 + $0x4] sm:$0x1]  ;;  %s450_s22 = sld [smem:[#allocation3 + %s449_s21]]  ;;  %s455_s24 = sadd.s32 7, %s1252_s28 }
  0x6e   : > { %v268_v63 = vadd.f32 %v267_v53, %v266_v55  ;;  %v273_v6 = vmul.f32 %v768_v30, %v196_v27  ;;  %v211_v8 = vmul.f32 %v1200_v20, %v210_v36  ;;  %v223_v13 = vmul.f32 %v1188_v3, %v182_v14  ;;  %s456_s26 = sld [smem:[#allocation3 + %s455_s24]]  ;;  %s461_s29 = sadd.s32 8, %s1252_s28 }
  0x6f   : > { %v252_v58 = vadd.f32 %v251_v41, %v248_v50  ;;  %v198_v11 = vadd.f32 %v197_v52, %v191_v62  ;;  %v220_v2 = vadd.f32 %v219_v61, %v216_v0  ;;  %v275_v7 = vmul.f32 %v769_v37, %v1205_v28  ;;  %v774_v52 = vld [vmem:[%s1176_s30 + $0x5] sm:$0x1]  ;;  %v776_v0 = vld [vmem:[%s1176_s30 + $0x8] sm:$0x1]  ;;  %s392_s24 = sld [smem:[#allocation5 + %s1246_s25]] }
  0x70   : > { %v270_v12 = vadd.f32 %v269_v56, %v268_v63  ;;  %v227_v22 = vmul.f32 %v765_v35, %v189_v19  ;;  %v279_v9 = vmul.f32 %v770_v15, %v210_v36  ;;  %v229_v3 = vmul.f32 %v1193_v10, %v196_v27  ;;  %v771_v35 = vld [vmem:[%s1176_s30 + $0x1] sm:$0x1]  ;;  %v777_v15 = vld [vmem:[%s1176_s30 + $0x9] sm:$0x1] }
  0x71   : > { %v256_v5 = vadd.f32 %v255_v42, %v252_v58  ;;  %v205_v17 = vadd.f32 %v204_v59, %v198_v11  ;;  %v222_v21 = vadd.f32 %v221_v4, %v220_v2  ;;  %v231_v19 = vmul.f32 %v1200_v20, %v1205_v28  ;;  %v415_v20 = vld [vmem:[%s1176_s30] sm:$0x1]  ;;  %v775_v58 = vld [vmem:[%s1176_s30 + $0x6] sm:$0x1] }
  0x72   : > { %v272_v18 = vadd.f32 %v271_v60, %v270_v12  ;;  %v235_v32 = vmul.f32 %v766_v46, %v210_v36  ;;  %v1260_v28 = vstv %s414_s5  ;;  %v1263_v36 = vstv %s420_s6  ;;  %s462_s5 = sld [smem:[#allocation3 + %s461_s29]] }
  0x73   : > { %v1225_v16 = vadd.f32 %v259_v51, %v256_v5  ;;  %v1230_v23 = vadd.f32 %v211_v8, %v205_v17  ;;  %v224_v25 = vadd.f32 %v223_v13, %v222_v21  ;;  %v417_v37 = vmul.f32 %v1260_v28, %v415_v20  ;;  %v780_v5 = vld [vmem:[%s1176_s30 + $0x7] sm:$0x1]  ;;  %v778_v21 = vld [vmem:[%s1176_s30 + $0xa] sm:$0x1] }
  0x74   : > { %v274_v24 = vadd.f32 %v273_v6, %v272_v18  ;;  %v423_v38 = vmul.f32 %v771_v35, %v1263_v36  ;;  %v1269_v40 = vstv %s426_s1  ;;  %v467_v43 = vmul.f32 %v771_v35, %v1260_v28 }
  0x75   : > { %v305_v1 = vsel %vm281_vm0, %v1225_v16, 0.0  ;;  %v282_v14 = vsel %vm281_vm0, %v1230_v23, 0.0  ;;  %v228_v29 = vadd.f32 %v227_v22, %v224_v25  ;;  %v429_v42 = vmul.f32 %v772_v39, %v1269_v40 }
  0x76   : > { %306 = vadd.xlane.f32.xlu1 %v305_v1  ;;  %v276_v26 = vadd.f32 %v275_v7, %v274_v24  ;;  %283 = vadd.xlane.f32.xlu0 %v282_v14  ;;  %v424_v41 = vadd.f32 %v423_v38, %v417_v37  ;;  %v469_v44 = vmul.f32 %v772_v39, %v1263_v36  ;;  %v434_v46 = vstv %s432_s13 }
  0x77   : > { %v230_v31 = vadd.f32 %v229_v3, %v228_v29  ;;  %v435_v49 = vmul.f32 %v773_v45, %v434_v46  ;;  %v472_v51 = vmul.f32 %v779_v47, %v1269_v40  ;;  %v440_v53 = vstv %s438_s17  ;;  %v781_v3 = vld [vmem:[%s1176_s30 + $0xb] sm:$0x1] }
  0x78   : > { %v1237_v30 = vadd.f32 %v279_v9, %v276_v26  ;;  %v430_v48 = vadd.f32 %v429_v42, %v424_v41  ;;  %v470_v50 = vadd.f32 %v469_v44, %v467_v43  ;;  %v441_v55 = vmul.f32 %v774_v52, %v440_v53 }
  0x79   : > { %v232_v34 = vadd.f32 %v231_v19, %v230_v31  ;;  %v474_v57 = vmul.f32 %v774_v52, %v434_v46  ;;  %v446_v59 = vstv %s444_s20  ;;  %v476_v63 = vmul.f32 %v775_v58, %v440_v53 }
  0x7a   : > { %v317_v33 = vsel %vm281_vm0, %v1237_v30, 0.0  ;;  %v436_v54 = vadd.f32 %v435_v49, %v430_v48  ;;  %v473_v56 = vadd.f32 %v472_v51, %v470_v50  ;;  %v447_v61 = vmul.f32 %v775_v58, %v446_v59  ;;  %v783_v50 = vld [vmem:[%s1176_s30 + $0xd] sm:$0x1] }
  0x7b   : > { %318 = vadd.xlane.f32.xlu1 %v317_v33  ;;  %v1241_v10 = vadd.f32 %v235_v32, %v232_v34  ;;  %v452_v4 = vstv %s450_s22  ;;  %v479_v12 = vmul.f32 %v780_v5, %v446_v59  ;;  %v458_v2 = vstv %s456_s26  ;;  %s387_s22 = sld [smem:[#allocation4 + %s1246_s25]]  ;;  %s754_s25 = sshll.u32 %s1172_s23, 1 }
  0x7c   : > { %v442_v60 = vadd.f32 %v441_v55, %v436_v54  ;;  %v475_v62 = vadd.f32 %v474_v57, %v473_v56  ;;  %v453_v8 = vmul.f32 %v776_v0, %v452_v4  ;;  %v459_v7 = vmul.f32 %v777_v15, %v458_v2  ;;  %v782_v54 = vld [vmem:[%s1176_s30 + $0xc] sm:$0x1]  ;;  %v784_v57 = vld [vmem:[%s1176_s30 + $0xe] sm:$0x1]  ;;  %s1349_s26 = scalar_lea.vmem [#allocation9], %s754_s25 }
  0x7d   : > { %v293_v27 = vsel %vm281_vm0, %v1241_v10, 0.0  ;;  %v481_v18 = vmul.f32 %v777_v15, %v452_v4  ;;  %v464_v22 = vstv %s462_s5  ;;  %v483_v25 = vmul.f32 %v778_v21, %v458_v2 }
  0x7e   : > { %294 = vadd.xlane.f32.xlu0 %v293_v27  ;;  %v448_v6 = vadd.f32 %v447_v61, %v442_v60  ;;  %v477_v11 = vadd.f32 %v476_v63, %v475_v62  ;;  %v465_v9 = vmul.f32 %v778_v21, %v464_v22  ;;  %v486_v29 = vmul.f32 %v781_v3, %v464_v22 }
  0x7f   : > { %v488_v19 = vmul.f32 %v773_v45, %v1260_v28  ;;  %v509_v33 = vmul.f32 %v774_v52, %v1260_v28  ;;  %v511_v34 = vmul.f32 %v775_v58, %v1263_v36  ;;  %v490_v27 = vmul.f32 %v774_v52, %v1263_v36 }
  0x80   : > { %v454_v13 = vadd.f32 %v453_v8, %v448_v6  ;;  %v480_v17 = vadd.f32 %v479_v12, %v477_v11  ;;  %v494_v20 = vmul.f32 %v776_v0, %v434_v46  ;;  %v513_v35 = vmul.f32 %v780_v5, %v1269_v40 }
  0x81   : > { %v519_v37 = vmul.f32 %v781_v3, %v446_v59  ;;  %v512_v39 = vadd.f32 %v511_v34, %v509_v33  ;;  %v491_v41 = vadd.f32 %v490_v27, %v488_v19  ;;  %v492_v28 = vmul.f32 %v775_v58, %v1269_v40  ;;  %v785_v58 = vld [vmem:[%s1176_s30 + $0xf] sm:$0x1] }
  0x82   : > { %v460_v1 = vadd.f32 %v459_v7, %v454_v13  ;;  %v482_v24 = vadd.f32 %v481_v18, %v480_v17  ;;  %v515_v42 = vmul.f32 %v777_v15, %v434_v46  ;;  %v517_v45 = vmul.f32 %v778_v21, %v440_v53 }
  0x83   : > { %v514_v43 = vadd.f32 %v513_v35, %v512_v39  ;;  %v493_v44 = vadd.f32 %v492_v28, %v491_v41  ;;  %v496_v36 = vmul.f32 %v777_v15, %v440_v53  ;;  %v498_v49 = vmul.f32 %v778_v21, %v446_v59 }
  0x84   : > { %v1287_v14 = vadd.f32 %v465_v9, %v460_v1  ;;  %v484_v26 = vadd.f32 %v483_v25, %v482_v24  ;;  %v521_v55 = vmul.f32 %v783_v50, %v452_v4  ;;  %v501_v56 = vmul.f32 %v782_v54, %v452_v4 }
  0x85   : > { %v516_v47 = vadd.f32 %v515_v42, %v514_v43  ;;  %v495_v48 = vadd.f32 %v494_v20, %v493_v44  ;;  %v523_v62 = vmul.f32 %v784_v57, %v458_v2  ;;  %v504_v40 = vmul.f32 %v783_v50, %v458_v2 }
  0x86   : > { %v528_v31 = vsel %vm281_vm0, %v1287_v14, 0.0  ;;  %v1292_v32 = vadd.f32 %v486_v29, %v484_v26  ;;  %v526_v0 = vmul.f32 %v785_v58, %v464_v22  ;;  %v507_v53 = vmul.f32 %v784_v57, %v464_v22 }
  0x87   : > { %529 = vadd.xlane.f32.xlu0 %v528_v31  ;;  %v518_v51 = vadd.f32 %v517_v45, %v516_v47  ;;  %v497_v52 = vadd.f32 %v496_v36, %v495_v48 }
  0x88   : > { %v539_v38 = vsel %vm281_vm0, %v1292_v32, 0.0 }
  0x89   : > { %540 = vadd.xlane.f32.xlu1 %v539_v38  ;;  %v520_v60 = vadd.f32 %v519_v37, %v518_v51  ;;  %v499_v61 = vadd.f32 %v498_v49, %v497_v52 }
  0x8b   : > { %v522_v46 = vadd.f32 %v521_v55, %v520_v60  ;;  %v502_v63 = vadd.f32 %v501_v56, %v499_v61 }
  0x8d   : > { %v524_v5 = vadd.f32 %v523_v62, %v522_v46  ;;  %v505_v6 = vadd.f32 %v504_v40, %v502_v63 }
  0x8f   : > { %v1305_v8 = vadd.f32 %v526_v0, %v524_v5  ;;  %v1307_v59 = vadd.f32 %v507_v53, %v505_v6 }
  0x91   : > { %v563_v40 = vsel %vm281_vm0, %v1305_v8, 0.0  ;;  %v551_v46 = vsel %vm281_vm0, %v1307_v59, 0.0 }
 0x103   : > { %v307_v11 = vpop.xlane.xlu1 %306  ;;  %v284_v15 = vpop.xlane.xlu0 %283 }
 0x104   : > { %v308_v12 = vrot.slane %v307_v11, 4  ;;  %v285_v4 = vrot.slane %v284_v15, 4 }
 0x106   : > { %v286_v13 = vadd.f32 %v285_v4, %v284_v15  ;;  %v309_v7 = vadd.f32 %v308_v12, %v307_v11 }
 0x108   : > { %v319_v17 = vpop.xlane.xlu1 %318  ;;  %v287_v18 = vrot.slane %v286_v13, 2  ;;  %v310_v9 = vrot.slane %v309_v7, 2 }
 0x109   : > { %v320_v2 = vrot.slane %v319_v17, 4 }
 0x10a   : > { %v288_v1 = vadd.f32 %v287_v18, %v286_v13  ;;  %v311_v31 = vadd.f32 %v310_v9, %v309_v7 }
 0x10b   : > { %v321_v21 = vadd.f32 %v320_v2, %v319_v17  ;;  %v295_v24 = vpop.xlane.xlu0 %294 }
 0x10c   : > { %v296_v25 = vrot.slane %v295_v24, 4  ;;  %v289_v3 = vrot.slane %v288_v1, 1  ;;  %v312_v20 = vrot.slane %v311_v31, 1 }
 0x10d   : > { %v322_v22 = vrot.slane %v321_v21, 2 }
 0x10e   : > { %v297_v26 = vadd.f32 %v296_v25, %v295_v24  ;;  %v290_v29 = vadd.f32 %v289_v3, %v288_v1  ;;  %v313_v39 = vadd.f32 %v312_v20, %v311_v31 }
 0x10f   : > { %v323_v19 = vadd.f32 %v322_v22, %v321_v21 }
 0x110   : > { %v298_v33 = vrot.slane %v297_v26, 2  ;;  %794 = vpush %v290_v29 }
 0x111   : > { %v324_v27 = vrot.slane %v323_v19, 1 }
 0x112   : > { %v299_v34 = vadd.f32 %v298_v33, %v297_v26 }
 0x113   : > { %v325_v38 = vadd.f32 %v324_v27, %v323_v19 }
 0x114   : > { %v300_v35 = vrot.slane %v299_v34, 1  ;;  %v530_v58 = vpop.xlane.xlu0 %529 }
 0x115   : > { %v531_v0 = vrot.slane %v530_v58, 4 }
 0x116   : > { %v301_v37 = vadd.f32 %v300_v35, %v299_v34  ;;  %v541_v63 = vpop.xlane.xlu1 %540 }
 0x117   : > { %v542_v53 = vrot.slane %v541_v63, 4  ;;  %v532_v5 = vadd.f32 %v531_v0, %v530_v58 }
 0x118   : > { %796 = vpush %v301_v37 }
 0x119   : > { %798 = vpush %v313_v39  ;;  %v543_v4 = vadd.f32 %v542_v53, %v541_v63  ;;  %v533_v17 = vrot.slane %v532_v5, 2 }
 0x11a   : > { %800 = vpush %v325_v38 }
 0x11b   : > { %v544_v22 = vrot.slane %v543_v4, 2  ;;  %v534_v33 = vadd.f32 %v533_v17, %v532_v5 }
 0x11d   : > { %v545_v39 = vadd.f32 %v544_v22, %v543_v4 }
 0x141   : > { %s795_s30 = spop %794 }
 0x142   : > { %v292_v41 = vstv %s795_s30 }
 0x149   : > { %s797_s28 = spop %796 }
 0x14a   : > { %v303_v28 = vstv %s797_s28  ;;  %s799_s6 = spop %798 }
 0x14b   : > { %v304_v42 = vadd.f32 %v303_v28, %v292_v41  ;;  %s801_s0 = spop %800  ;;  %v315_v43 = vstv %s799_s6  ;;  %s633_s6 = sld [smem:[#allocation4 + %s1249_s27]] }
 0x14c   : > { %v327_v45 = vstv %s801_s0  ;;  %s638_s0 = sld [smem:[#allocation5 + %s1249_s27]]  ;;  %s793_s27 = sshll.u32 %s1090_s10, 5 }
 0x14d   : > { %v316_v44 = vadd.f32 %v315_v43, %v304_v42  ;;  %s1023_s10 = smov [#allocation9]  }
 0x14f   : > { %v328_v36 = vadd.f32 %v327_v45, %v316_v44 }
 0x151   : > { %v1309_v47 = vmul.f32 0.001953125, %v328_v36  ;;  %v535_v36 = vrot.slane %v534_v33, 1 }
 0x153   : > { %v344_v48 = vsub.f32 %v1241_v10, %v1309_v47  ;;  %v330_v49 = vsub.f32 %v1230_v23, %v1309_v47  ;;  %v372_v50 = vsub.f32 %v1237_v30, %v1309_v47  ;;  %v358_v51 = vsub.f32 %v1225_v16, %v1309_v47 }
 0x155   : > { %v345_v52 = vmul.f32 %v344_v48, %v344_v48  ;;  %v331_v54 = vmul.f32 %v330_v49, %v330_v49  ;;  %v373_v57 = vmul.f32 %v372_v50, %v372_v50  ;;  %v359_v60 = vmul.f32 %v358_v51, %v358_v51 }
 0x157   : > { %v346_v55 = vsel %vm281_vm0, %v345_v52, 0.0  ;;  %v332_v56 = vsel %vm281_vm0, %v331_v54, 0.0  ;;  %v374_v61 = vsel %vm281_vm0, %v373_v57, 0.0  ;;  %v360_v62 = vsel %vm281_vm0, %v359_v60, 0.0 }
 0x158   : > { %347 = vadd.xlane.f32.xlu1 %v346_v55  ;;  %333 = vadd.xlane.f32.xlu0 %v332_v56  ;;  %v546_v52 = vrot.slane %v545_v39, 1  ;;  %v536_v60 = vadd.f32 %v535_v36, %v534_v33 }
 0x15c   : > { %375 = vadd.xlane.f32.xlu1 %v374_v61  ;;  %361 = vadd.xlane.f32.xlu0 %v360_v62 }
 0x160   : > { %564 = vadd.xlane.f32.xlu1 %v563_v40  ;;  %552 = vadd.xlane.f32.xlu0 %v551_v46  ;;  %v547_v40 = vadd.f32 %v546_v52, %v545_v39  ;;  %v394_v39 = vstv %s392_s24 }
 0x1e5   : > { %v348_v6 = vpop.xlane.xlu1 %347  ;;  %v334_v11 = vpop.xlane.xlu0 %333 }
 0x1e6   : > { %v349_v12 = vrot.slane %v348_v6, 4  ;;  %v335_v15 = vrot.slane %v334_v11, 4 }
 0x1e8   : > { %v350_v13 = vadd.f32 %v349_v12, %v348_v6  ;;  %v336_v7 = vadd.f32 %v335_v15, %v334_v11 }
 0x1e9   : > { %v376_v18 = vpop.xlane.xlu1 %375  ;;  %v362_v2 = vpop.xlane.xlu0 %361 }
 0x1ea   : > { %v351_v21 = vrot.slane %v350_v13, 2  ;;  %v337_v1 = vrot.slane %v336_v7, 2  ;;  %v377_v9 = vrot.slane %v376_v18, 4  ;;  %v363_v24 = vrot.slane %v362_v2, 4 }
 0x1ec   : > { %v378_v25 = vadd.f32 %v377_v9, %v376_v18  ;;  %v364_v3 = vadd.f32 %v363_v24, %v362_v2  ;;  %v338_v26 = vadd.f32 %v337_v1, %v336_v7  ;;  %v352_v29 = vadd.f32 %v351_v21, %v350_v13 }
 0x1ed   : > { %v565_v19 = vpop.xlane.xlu1 %564  ;;  %v553_v31 = vpop.xlane.xlu0 %552 }
 0x1ee   : > { %v379_v34 = vrot.slane %v378_v25, 2  ;;  %v365_v27 = vrot.slane %v364_v3, 2  ;;  %v566_v20 = vrot.slane %v565_v19, 4  ;;  %v554_v35 = vrot.slane %v553_v31, 4 }
 0x1ef   : > { %v339_v37 = vrot.slane %v338_v26, 1  ;;  %v353_v38 = vrot.slane %v352_v29, 1 }
 0x1f0   : > { %v567_v41 = vadd.f32 %v566_v20, %v565_v19  ;;  %v555_v28 = vadd.f32 %v554_v35, %v553_v31  ;;  %v366_v42 = vadd.f32 %v365_v27, %v364_v3  ;;  %v380_v43 = vadd.f32 %v379_v34, %v378_v25 }
 0x1f1   : > { %v340_v44 = vadd.f32 %v339_v37, %v338_v26  ;;  %v354_v45 = vadd.f32 %v353_v38, %v352_v29  ;;  %v390_v27 = vstv %s387_s22 }
 0x1f2   : > { %v568_v48 = vrot.slane %v567_v41, 2  ;;  %v556_v49 = vrot.slane %v555_v28, 2  ;;  %v367_v50 = vrot.slane %v366_v42, 1  ;;  %v381_v51 = vrot.slane %v380_v43, 1 }
 0x1f3   : > { %802 = vpush %v340_v44 }
 0x1f4   : > { %804 = vpush %v354_v45  ;;  %v368_v54 = vadd.f32 %v367_v50, %v366_v42  ;;  %v382_v55 = vadd.f32 %v381_v51, %v380_v43  ;;  %v557_v56 = vadd.f32 %v556_v49, %v555_v28  ;;  %v569_v57 = vadd.f32 %v568_v48, %v567_v41 }
 0x1f6   : > { %806 = vpush %v368_v54  ;;  %v558_v61 = vrot.slane %v557_v56, 1  ;;  %v570_v62 = vrot.slane %v569_v57, 1 }
 0x1f7   : > { %808 = vpush %v382_v55 }
 0x1f8   : > { %810 = vpush %v536_v60  ;;  %v559_v46 = vadd.f32 %v558_v61, %v557_v56  ;;  %v571_v58 = vadd.f32 %v570_v62, %v569_v57 }
 0x1f9   : > { %812 = vpush %v547_v40 }
 0x1fa   : > { %814 = vpush %v559_v46 }
 0x1fb   : > { %816 = vpush %v571_v58 }
 0x224   : > { %s803_s1 = spop %802 }
 0x225   : > { %v342_v63 = vstv %s803_s1  ;;  %s805_s11 = spop %804  ;;  %s673_s1 = sshll.u32 %s1349_s26, 4  ;;  %s1366_s1 = int_to_ptr.vmem [resolvable:$true] %s673_s1 }
 0x226   : > { %v356_v0 = vstv %s805_s11 }
 0x227   : > { %v357_v53 = vadd.f32 %v356_v0, %v342_v63  ;;  %s807_s13 = spop %806 }
 0x228   : > { %v370_v5 = vstv %s807_s13  ;;  %s809_s14 = spop %808 }
 0x229   : > { %v371_v6 = vadd.f32 %v370_v5, %v357_v53  ;;  %s811_s17 = spop %810  ;;  %v384_v11 = vstv %s809_s14  ;;  %s1364_s14 = scalar_lea.hbm %s1412_s4, %s793_s27 }
 0x22a   : > { %v538_v12 = vstv %s811_s17  ;;  %s813_s16 = spop %812  ;;  %s660_s17 = scalar_lea.sflag [#allocation8], %s1172_s23 }
 0x22b   : > { %v385_v15 = vadd.f32 %v384_v11, %v371_v6  ;;  %v549_v4 = vstv %s813_s16  ;;  %s815_s20 = spop %814  ;;  %s947_s16 = scalar_lea.vmem %s1366_s1, 32 }
 0x22c   : > { %v550_v13 = vadd.f32 %v549_v4, %v538_v12  ;;  %v561_v7 = vstv %s815_s20  ;;  %s817_s21 = spop %816  ;;  %p948_p5 = scmp.ne.s32.totalorder %s1366_s1, %s947_s16 }
 0x22d   : > { %v386_v17 = vmul.f32 0.001953125, %v385_v15  ;;  %v573_v21 = vstv %s817_s21  ;;  %s951_s20 = sshll.u32 %s1023_s10, 4  ;;  %s952_s20 = int_to_ptr.vmem [resolvable:$false] %s951_s20 }
 0x22e   : > { %v562_v18 = vadd.f32 %v561_v7, %v550_v13  ;;  %p949_p10 = pnand %p948_p5, %p1421_p9  ;;  %s953_s21 = scalar_lea.vmem %s952_s20, 64 }
 0x22f   : > { %v388_v2 = vadd.f32 1e-05, %v386_v17  ;;  %p954_p7 = scmp.lt.s32.totalorder %s1366_s1, %s952_s20  ;;  %p955_p8 = scmp.lt.s32.totalorder %s953_s21, %s947_s16 }
 0x230   : > { %v574_v1 = vadd.f32 %v573_v21, %v562_v18  ;;  %p950_p11 = pneg %p949_p10 }
 0x231   : > { %879 = vrsqrt.f32 %v388_v2  ;;  %p956_p12 = por %p955_p8, %p954_p7 }
 0x232   : > { %v1328_v9 = vmul.f32 0.001953125, %v574_v1 }
 0x233   : > { %p957_p0 = pnand %p956_p12, %p950_p11 }
 0x234   : > { %v590_v24 = vsub.f32 %v1292_v32, %v1328_v9  ;;  %v576_v22 = vsub.f32 %v1287_v14, %v1328_v9  ;;  %v618_v25 = vsub.f32 %v1305_v8, %v1328_v9  ;;  %v604_v3 = vsub.f32 %v1307_v59, %v1328_v9 }
 0x236   : > { %v591_v26 = vmul.f32 %v590_v24, %v590_v24  ;;  %v577_v29 = vmul.f32 %v576_v22, %v576_v22  ;;  %v619_v33 = vmul.f32 %v618_v25, %v618_v25  ;;  %v605_v34 = vmul.f32 %v604_v3, %v604_v3 }
 0x238   : > { %v592_v19 = vsel %vm281_vm0, %v591_v26, 0.0  ;;  %v578_v31 = vsel %vm281_vm0, %v577_v29, 0.0  ;;  %v620_v37 = vsel %vm281_vm0, %v619_v33, 0.0  ;;  %v606_v38 = vsel %vm281_vm0, %v605_v34, 0.0 }
 0x239   : > { %593 = vadd.xlane.f32.xlu1 %v592_v19  ;;  %579 = vadd.xlane.f32.xlu0 %v578_v31 }
 0x23b   : > { %v880_v20 = vpop.eup %879 }
 0x23c   : > { %v391_v35 = vmul.f32 %v880_v20, %v390_v27  ;;  %v636_v20 = vstv %s633_s6 }
 0x23d   : > { %621 = vadd.xlane.f32.xlu1 %v620_v37  ;;  %607 = vadd.xlane.f32.xlu0 %v606_v38  ;;  %v640_v38 = vstv %s638_s0 }
 0x23e   : > { %v393_v41 = vmul.f32 %v391_v35, %v1309_v47  ;;  %v396_v42 = vmul.f32 %v391_v35, %v1230_v23  ;;  %v399_v43 = vmul.f32 %v391_v35, %v1241_v10  ;;  %v403_v44 = vmul.f32 %v391_v35, %v1225_v16 }
 0x23f   : > { %v407_v49 = vmul.f32 %v391_v35, %v1237_v30 }
 0x240   : > { %v395_v28 = vsub.f32 %v394_v39, %v393_v41 }
 0x242   : > { %v397_v45 = vadd.f32 %v396_v42, %v395_v28  ;;  %v400_v36 = vadd.f32 %v399_v43, %v395_v28  ;;  %v404_v48 = vadd.f32 %v403_v44, %v395_v28  ;;  %v408_v52 = vadd.f32 %v407_v49, %v395_v28 }
 0x244   : > { %v398_v50 = vmax.f32 %v397_v45, 0.0  ;;  %v401_v51 = vmax.f32 %v400_v36, 0.0  ;;  %v405_v55 = vmax.f32 %v404_v48, 0.0  ;;  %v409_v47 = vmax.f32 %v408_v52, 0.0 }
 0x246   : > { %v402_v54 = vmax.f32 %v398_v50, %v401_v51 }
 0x248   : > { %v406_v56 = vmax.f32 %v402_v54, %v405_v55 }
 0x24a   : > { %v410_v57 = vmax.f32 %v406_v56, %v409_v47 }
 0x24c   : > { %411 = vst [vmem:[%s1349_s26] sm:$0x1] %v410_v57 }
 0x2c6   : > { %v594_v23 = vpop.xlane.xlu1 %593  ;;  %v580_v16 = vpop.xlane.xlu0 %579 }
 0x2c7   : > { %v595_v10 = vrot.slane %v594_v23, 4  ;;  %v581_v60 = vrot.slane %v580_v16, 4 }
 0x2c9   : > { %v596_v61 = vadd.f32 %v595_v10, %v594_v23  ;;  %v582_v62 = vadd.f32 %v581_v60, %v580_v16 }
 0x2ca   : > { %v622_v30 = vpop.xlane.xlu1 %621  ;;  %v608_v40 = vpop.xlane.xlu0 %607 }
 0x2cb   : > { %v597_v46 = vrot.slane %v596_v61, 2  ;;  %v583_v58 = vrot.slane %v582_v62, 2  ;;  %v623_v63 = vrot.slane %v622_v30, 4  ;;  %v609_v0 = vrot.slane %v608_v40, 4 }
 0x2cd   : > { %v624_v53 = vadd.f32 %v623_v63, %v622_v30  ;;  %v610_v5 = vadd.f32 %v609_v0, %v608_v40  ;;  %v584_v6 = vadd.f32 %v583_v58, %v582_v62  ;;  %v598_v11 = vadd.f32 %v597_v46, %v596_v61 }
 0x2cf   : > { %v625_v12 = vrot.slane %v624_v53, 2  ;;  %v611_v15 = vrot.slane %v610_v5, 2  ;;  %v585_v4 = vrot.slane %v584_v6, 1  ;;  %v599_v13 = vrot.slane %v598_v11, 1 }
 0x2d1   : > { %v626_v7 = vadd.f32 %v625_v12, %v624_v53  ;;  %v612_v17 = vadd.f32 %v611_v15, %v610_v5  ;;  %v586_v18 = vadd.f32 %v585_v4, %v584_v6  ;;  %v600_v2 = vadd.f32 %v599_v13, %v598_v11 }
 0x2d3   : > { %818 = vpush %v586_v18  ;;  %v613_v21 = vrot.slane %v612_v17, 1  ;;  %v627_v1 = vrot.slane %v626_v7, 1 }
 0x2d4   : > { %820 = vpush %v600_v2 }
 0x2d5   : > { %v614_v24 = vadd.f32 %v613_v21, %v612_v17  ;;  %v628_v22 = vadd.f32 %v627_v1, %v626_v7 }
 0x2d7   : > { %822 = vpush %v614_v24 }
 0x2d8   : > { %824 = vpush %v628_v22 }
 0x304   : > { %s819_s29 = spop %818 }
 0x305   : > { %v588_v25 = vstv %s819_s29  ;;  %s821_s5 = spop %820 }
 0x306   : > { %v602_v3 = vstv %s821_s5 }
 0x307   : > { %v603_v26 = vadd.f32 %v602_v3, %v588_v25 }
 0x308   : > { %s823_s30 = spop %822 }
 0x309   : > { %v616_v29 = vstv %s823_s30  ;;  %s825_s28 = spop %824 }
 0x30a   : > { %v617_v19 = vadd.f32 %v616_v29, %v603_v26  ;;  %v630_v31 = vstv %s825_s28 }
 0x30c   : > { %v631_v33 = vadd.f32 %v630_v31, %v617_v19 }
 0x30e   : > { %v632_v34 = vmul.f32 0.001953125, %v631_v33 }
 0x310   : > { %v634_v27 = vadd.f32 1e-05, %v632_v34 }
 0x312   : > { %881 = vrsqrt.f32 %v634_v27 }
 0x31c   : > { %v882_v35 = vpop.eup %881 }
 0x31d   : > { %v637_v37 = vmul.f32 %v882_v35, %v636_v20 }
 0x31f   : > { %v639_v39 = vmul.f32 %v637_v37, %v1328_v9  ;;  %v642_v28 = vmul.f32 %v637_v37, %v1287_v14  ;;  %v645_v42 = vmul.f32 %v637_v37, %v1292_v32  ;;  %v649_v43 = vmul.f32 %v637_v37, %v1307_v59 }
 0x320   : > { %v653_v48 = vmul.f32 %v637_v37, %v1305_v8 }
 0x321   : > { %v641_v41 = vsub.f32 %v640_v38, %v639_v39 }
 0x323   : > { %v643_v44 = vadd.f32 %v642_v28, %v641_v41  ;;  %v646_v45 = vadd.f32 %v645_v42, %v641_v41  ;;  %v650_v36 = vadd.f32 %v649_v43, %v641_v41  ;;  %v654_v51 = vadd.f32 %v653_v48, %v641_v41 }
 0x325   : > { %v644_v49 = vmax.f32 %v643_v44, 0.0  ;;  %v647_v50 = vmax.f32 %v646_v45, 0.0  ;;  %v651_v9 = vmax.f32 %v650_v36, 0.0  ;;  %v655_v54 = vmax.f32 %v654_v51, 0.0 }
 0x327   : > { %v648_v52 = vmax.f32 %v644_v49, %v647_v50 }
 0x329   : > { %v652_v14 = vmax.f32 %v648_v52, %v651_v9 }
 0x32b   : > { %v656_v32 = vmax.f32 %v652_v14, %v655_v54 }
 0x32d   : > { %786 = vst [vmem:[%s1349_s26 + $0x1] sm:$0x1] %v656_v32 }
 0x32e   : > { %960 = shalt.err (!%p957_p0)
}
 0x32f   : > { %s961_s22 = scalar_lea.hbm %s1364_s14, 32  ;;  %s965_s26 = scalar_lea.hbm %s1412_s4, 128 }
 0x330   : > { %p962_p2 = scmp.ne.s32.totalorder %s1364_s14, %s961_s22  ;;  %p966_p13 = scmp.lt.u32.totalorder %s1364_s14, %s1412_s4 }
 0x331   : > { %p967_p1 = scmp.lt.u32.totalorder %s965_s26, %s961_s22  ;;  %p969_p5 = scmp.lt.u32.totalorder %s961_s22, %s1364_s14 }
 0x332   : > { %p963_p3 = pnand %p962_p2, %p1421_p9 }
 0x333   : > { %p968_p6 = por %p967_p1, %p966_p13 }
 0x334   : > { %p964_p4 = pneg %p963_p3 }
 0x335   : > { %p970_p10 = por %p969_p5, %p968_p6 }
 0x337   : > { %p971_p11 = pnand %p970_p10, %p964_p4 }
 0x339   : > { %974 = shalt.err (!%p971_p11)
}
 0x33a   : > { %s1024_s30 = smov 16   ;;  %s1025_s28 = smov 1  }
 0x33b   : > { %828 = dma.vmem_to_hbm [thread:$0]  (%p1421_p9), %s1366_s1, 32, %s1364_s14, %s660_s17, %s1024_s30, %s1024_s30, %s1025_s28  }
 0x33c PF: > { %p839_p7 = scmp.ge.s32.totalorder %s1015_s9, 2  ;;  %s688_s6 = sand.u32 1, %s1003_s2  }
 0x33d   : > { %p1422_p8 = scmp.ne.s32.totalorder %s1419_s19, 0  ;;  %s689_s0 = scalar_lea.sflag [#allocation8], %s688_s6 }
 0x33f   : > { %p835_p12 = pnand %p839_p7, %p1422_p8 }
 0x341   : > { %998 = dma.done.wait (!%p835_p12), %s689_s0, 32  }
 0x342   : > { %1000 = vsyncadd (!%p835_p12), %s689_s0, 4294967264  ;;  %p29_p0 = scmp.ge.s32.totalorder %s1094_s12, 6   ;;  %s1423_s2 = smov %s1007_s7 }
 0x343   : > { %s1424_s7 = smov %s1011_s8  ;;  %s1425_s8 = smov %s1106_s15 }
 0x344   : > { %s1426_s9 = smov %s1094_s12  ;;  %31 = sbr.rel (!%p29_p0) target bundleno = 38 (0x26), region = 85 }
 0x34b   :  { %694 = vsyncpa [#allocation7], 1 }
 0x34c   :  { %696 = vsyncpa [#allocation7 + $0x1], 1 }
 0x34d   :  { %697 = vsyncpa [#allocation8], 1 }
 0x34e   :  { %699 = vsyncpa [#allocation8 + $0x1], 1 }

</bundles_post_ra>
